<compile_context>
chip_gen: v7x
topology: tpu7x:2x2x1
jax: 0.10.0
libtpu: 0.0.40
codegen_flags: <defaults>
</compile_context>

<pallas_src>
import functools

import jax
import jax.numpy as jnp
from jax.experimental import pallas as pl
from jax.experimental.pallas import tpu as pltpu


# --------------------------- packing helpers ------------------------------- #

def _round_up(x, m):
    return (x + m - 1) // m * m


def _pad_row(v, width):
    v = v.reshape(1, -1).astype(jnp.float32)
    return jnp.pad(v, ((0, 0), (0, width - v.shape[-1])))


# Row layout of the packed per-block vector buffer (depth, 16, PW):
_LN1_G, _LN1_B, _QKV_B, _PROJ_B, _LS1, _LN2_G, _LN2_B, _FC1_B, _FC2_B, _LS2 = range(10)
# Row layout of the packed global vector buffer (8, PW):
_PATCH_B, _CLS, _NORM_G, _NORM_B, _HEAD_B = range(5)


# ------------------------------ fused kernel -------------------------------- #

def _uni_kernel(patches_ref, patch_w_ref, pos_ref, head_w_ref, gvec_ref,
                qkv_w_ref, proj_w_ref, fc1_w_ref, fc2_w_ref, bvec_ref,
                o_ref, *, D, H, depth, hidden, nc_pad, eps):
    f32 = jnp.float32
    hd = D // H
    scale = hd ** -0.5

    gv = gvec_ref[...]
    patch_b = gv[_PATCH_B:_PATCH_B + 1, :D]
    cls_tok = gv[_CLS:_CLS + 1, :D]
    norm_g = gv[_NORM_G:_NORM_G + 1, :D]
    norm_b = gv[_NORM_B:_NORM_B + 1, :D]
    head_b = gv[_HEAD_B:_HEAD_B + 1, :nc_pad]

    def layernorm(z, g, b):
        m = jnp.mean(z, axis=-1, keepdims=True)
        zc = z - m
        var = jnp.mean(zc * zc, axis=-1, keepdims=True)
        return zc * jax.lax.rsqrt(var + eps) * g + b

    # Patch embed: Conv2d(k=16, s=16) == matmul over flattened patches.
    patches = patches_ref[0]                                            # (nP, Cpp)
    tok = jnp.dot(patches, patch_w_ref[...], preferred_element_type=f32) + patch_b

    # Prepend cls token, add positional embedding.  (T, D) stays VMEM-resident.
    x = jnp.concatenate([cls_tok, tok], axis=0) + pos_ref[...]

    for d in range(depth):                     # depth is static -> unrolled
        bv = bvec_ref[d]                                                # (16, PW)
        ln1_g = bv[_LN1_G:_LN1_G + 1, :D]
        ln1_b = bv[_LN1_B:_LN1_B + 1, :D]
        qkv_b = bv[_QKV_B:_QKV_B + 1, :3 * D]
        proj_b = bv[_PROJ_B:_PROJ_B + 1, :D]
        ls1 = bv[_LS1:_LS1 + 1, :D]
        ln2_g = bv[_LN2_G:_LN2_G + 1, :D]
        ln2_b = bv[_LN2_B:_LN2_B + 1, :D]
        fc1_b = bv[_FC1_B:_FC1_B + 1, :hidden]
        fc2_b = bv[_FC2_B:_FC2_B + 1, :D]
        ls2 = bv[_LS2:_LS2 + 1, :D]

        # ---- attention ----
        y = layernorm(x, ln1_g, ln1_b)
        qkv = jnp.dot(y, qkv_w_ref[d], preferred_element_type=f32) + qkv_b   # (T, 3D)

        head_outs = []
        for h in range(H):                    # static lane slices, no transposes
            q = qkv[:, h * hd:(h + 1) * hd] * scale       # fold scale into smaller q
            k = qkv[:, D + h * hd:D + (h + 1) * hd]
            v = qkv[:, 2 * D + h * hd:2 * D + (h + 1) * hd]
            s = jax.lax.dot_general(q, k, (((1,), (1,)), ((), ())),
                                    preferred_element_type=f32)              # (T, T)
            s = s - jnp.max(s, axis=-1, keepdims=True)
            p = jnp.exp(s)
            p = p * pl.reciprocal(jnp.sum(p, axis=-1, keepdims=True), approx=True)
            head_outs.append(jnp.dot(p, v, preferred_element_type=f32))      # (T, hd)
        attn = jnp.concatenate(head_outs, axis=1)                            # (T, D)

        proj = jnp.dot(attn, proj_w_ref[d], preferred_element_type=f32) + proj_b
        x = x + ls1 * proj                                                   # LayerScale + residual

        # ---- MLP ----
        y = layernorm(x, ln2_g, ln2_b)
        h1 = jnp.dot(y, fc1_w_ref[d], preferred_element_type=f32) + fc1_b
        # TODO(synk): PyTorch nn.GELU defaults to exact erf-GELU; tanh approximation
        # used for guaranteed Mosaic lowering (difference < 1e-3).
        h1 = 0.5 * h1 * (1.0 + jnp.tanh(0.7978845608028654 *
                                        (h1 + 0.044715 * h1 * h1 * h1)))
        h2 = jnp.dot(h1, fc2_w_ref[d], preferred_element_type=f32) + fc2_b
        x = x + ls2 * h2                                                     # LayerScale + residual

    # global_pool='token' -> only the cls token survives, so the final LayerNorm
    # (per-token op) only needs to run on row 0.  fc_norm = Identity.
    feat = layernorm(x[0:1, :], norm_g, norm_b)                              # (1, D)
    out = jnp.dot(feat, head_w_ref[...], preferred_element_type=f32) + head_b
    o_ref[0] = out.astype(o_ref.dtype)                                       # lane-dense (1, nc_pad)


# ------------------------------ forward glue -------------------------------- #

def _shared_spec(shape):
    zeros = (0,) * len(shape)
    return pl.BlockSpec(shape, lambda b, _z=zeros: _z)


@functools.partial(jax.jit, static_argnames=("patch", "num_heads", "num_classes"))
def uni_forward(x, params, *, patch, num_heads, num_classes):
    """x: (B, C, H, W) NCHW. Returns logits (B, num_classes)."""
    B, C, Himg, Wimg = x.shape
    gh, gw = Himg // patch, Wimg // patch
    nP = gh * gw
    Cpp = C * patch * patch

    # Patch extraction glue (pure layout; no compute).
    patches = (x.reshape(B, C, gh, patch, gw, patch)
                .transpose(0, 2, 4, 1, 3, 5)
                .reshape(B, nP, Cpp))

    D = params["patch_w"].shape[1]
    T = params["pos_embed"].shape[0]
    depth = params["qkv_w"].shape[0]
    hidden = params["fc1_w"].shape[2]
    nc_pad = params["head_w"].shape[1]        # head weight is lane-padded (zeros)
    assert T == nP + 1

    kernel = functools.partial(
        _uni_kernel, D=D, H=num_heads, depth=depth,
        hidden=hidden, nc_pad=nc_pad, eps=1e-6)   # timm ViT LayerNorm eps

    shared = (params["patch_w"], params["pos_embed"], params["head_w"],
              params["glob_vec"], params["qkv_w"], params["proj_w"],
              params["fc1_w"], params["fc2_w"], params["blk_vec"])

    in_specs = [pl.BlockSpec((1, nP, Cpp), lambda b: (b, 0, 0))]
    in_specs += [_shared_spec(a.shape) for a in shared]

    out = pl.pallas_call(
        kernel,
        out_shape=jax.ShapeDtypeStruct((B, 1, nc_pad), jnp.float32),
        grid=(B,),
        in_specs=in_specs,
        out_specs=pl.BlockSpec((1, 1, nc_pad), lambda b: (b, 0, 0)),
        compiler_params=pltpu.CompilerParams(
            dimension_semantics=("parallel",)),     # v7x: shard batch over 2 TCs
    )(patches, *shared)
    return out.reshape(B, nc_pad)[:, :num_classes]


# ------------------------------ params (packed) ------------------------------ #

def init_params(key, *, embed_dim, depth, num_heads, mlp_ratio, patch,
                in_chans, num_classes, num_patches, init_values=1e-5):
    D = embed_dim
    hidden = D * mlp_ratio
    T = num_patches + 1
    NCpad = _round_up(max(num_classes, 128), 128)                 # lane-dense head/output
    PW = _round_up(max(3 * D, hidden, D, NCpad, 128), 128)        # packed lane width

    def trunc(k, shape, std=0.02):
        return (std * jax.random.truncated_normal(k, -2.0, 2.0, shape)).astype(jnp.float32)

    keys = jax.random.split(key, 4 + depth)

    # Globals packed into one lane-dense buffer (one DMA).
    grows = [
        _pad_row(jnp.zeros((D,), jnp.float32), PW),           # patch_b
        _pad_row(trunc(keys[1], (D,)), PW),                   # cls_token
        _pad_row(jnp.ones((D,), jnp.float32), PW),            # norm_g
        _pad_row(jnp.zeros((D,), jnp.float32), PW),           # norm_b
        _pad_row(jnp.zeros((num_classes,), jnp.float32), PW), # head_b (zero-padded)
    ]
    grows += [jnp.zeros((1, PW), jnp.float32)] * (8 - len(grows))
    glob_vec = jnp.concatenate(grows, axis=0)                 # (8, PW)

    # Head weight lane-padded with zeros so padded logit columns are exactly 0.
    head_w = jnp.zeros((D, NCpad), jnp.float32)
    head_w = head_w.at[:, :num_classes].set(trunc(keys[3], (D, num_classes)))

    qkv_ws, proj_ws, fc1_ws, fc2_ws, bvecs = [], [], [], [], []
    for d in range(depth):
        bk = jax.random.split(keys[4 + d], 4)
        qkv_ws.append(trunc(bk[0], (D, 3 * D)))
        proj_ws.append(trunc(bk[1], (D, D)))
        fc1_ws.append(trunc(bk[2], (D, hidden)))
        fc2_ws.append(trunc(bk[3], (hidden, D)))
        rows = [
            _pad_row(jnp.ones((D,), jnp.float32), PW),               # ln1_g
            _pad_row(jnp.zeros((D,), jnp.float32), PW),              # ln1_b
            _pad_row(jnp.zeros((3 * D,), jnp.float32), PW),          # qkv_b
            _pad_row(jnp.zeros((D,), jnp.float32), PW),              # proj_b
            _pad_row(jnp.full((D,), init_values, jnp.float32), PW),  # ls1
            _pad_row(jnp.ones((D,), jnp.float32), PW),               # ln2_g
            _pad_row(jnp.zeros((D,), jnp.float32), PW),              # ln2_b
            _pad_row(jnp.zeros((hidden,), jnp.float32), PW),         # fc1_b
            _pad_row(jnp.zeros((D,), jnp.float32), PW),              # fc2_b
            _pad_row(jnp.full((D,), init_values, jnp.float32), PW),  # ls2
        ]
        rows += [jnp.zeros((1, PW), jnp.float32)] * (16 - len(rows))
        bvecs.append(jnp.concatenate(rows, axis=0))                  # (16, PW)

    return {
        "patch_w": trunc(keys[0], (in_chans * patch * patch, D)),
        # TODO(synk): timm dynamic_img_size bicubic pos-embed resampling is skipped;
        # pos_embed is created directly at the target grid size.
        "pos_embed": trunc(keys[2], (T, D)),
        "head_w": head_w,               # (D, NCpad), zero lane padding
        "glob_vec": glob_vec,
        "qkv_w": jnp.stack(qkv_ws),     # (depth, D, 3D)
        "proj_w": jnp.stack(proj_ws),   # (depth, D, D)
        "fc1_w": jnp.stack(fc1_ws),     # (depth, D, hidden)
        "fc2_w": jnp.stack(fc2_ws),     # (depth, hidden, D)
        "blk_vec": jnp.stack(bvecs),    # (depth, 16, PW)
    }


if __name__ == "__main__":
    # Small synthetic configuration.
    B, C, IMG = 2, 3, 32
    PATCH = 16
    EMBED_DIM = 32
    DEPTH = 2
    NUM_HEADS = 4
    MLP_RATIO = 4
    NUM_CLASSES = 8
    NUM_PATCHES = (IMG // PATCH) ** 2

    key = jax.random.PRNGKey(0)
    kx, kp = jax.random.split(key)
    x = jax.random.normal(kx, (B, C, IMG, IMG), jnp.float32)

    params = init_params(
        kp, embed_dim=EMBED_DIM, depth=DEPTH, num_heads=NUM_HEADS,
        mlp_ratio=MLP_RATIO, patch=PATCH, in_chans=C,
        num_classes=NUM_CLASSES, num_patches=NUM_PATCHES,
    )

    out = uni_forward(x, params, patch=PATCH, num_heads=NUM_HEADS,
                      num_classes=NUM_CLASSES)
    out = jax.block_until_ready(out)
    assert out.shape == (B, NUM_CLASSES) and out.dtype == jnp.float32
    assert bool(jnp.all(jnp.isfinite(out)))
    print("KERNEL_OK")
</pallas_src>

<mosaic_0001>
module attributes {stable_mosaic.version = 11 : i64} {
  func.func @_uni_kernel(%arg0: i32, %arg1: memref<1x4x768xf32, #tpu.memory_space<vmem>>, %arg2: memref<768x32xf32, #tpu.memory_space<vmem>>, %arg3: memref<5x32xf32, #tpu.memory_space<vmem>>, %arg4: memref<32x128xf32, #tpu.memory_space<vmem>>, %arg5: memref<8x128xf32, #tpu.memory_space<vmem>>, %arg6: memref<2x32x96xf32, #tpu.memory_space<vmem>>, %arg7: memref<2x32x32xf32, #tpu.memory_space<vmem>>, %arg8: memref<2x32x128xf32, #tpu.memory_space<vmem>>, %arg9: memref<2x128x32xf32, #tpu.memory_space<vmem>>, %arg10: memref<2x16x128xf32, #tpu.memory_space<vmem>>, %arg11: memref<1x1x128xf32, #tpu.memory_space<vmem>>) attributes {dimension_semantics = [#tpu.dimension_semantics<parallel>], iteration_bounds = array<i64: 2>, scalar_prefetch = 0 : i64, scratch_operands = 0 : i64, tpu.core_type = #tpu.core_type<tc>, window_params = [{transform_indices = @transform_0, window_bounds = array<i64: 1, 4, 768>}, {pipeline_mode = #tpu.pipeline_mode<synchronous>, transform_indices = @transform_1, window_bounds = array<i64: 768, 32>}, {pipeline_mode = #tpu.pipeline_mode<synchronous>, transform_indices = @transform_2, window_bounds = array<i64: 5, 32>}, {pipeline_mode = #tpu.pipeline_mode<synchronous>, transform_indices = @transform_3, window_bounds = array<i64: 32, 128>}, {pipeline_mode = #tpu.pipeline_mode<synchronous>, transform_indices = @transform_4, window_bounds = array<i64: 8, 128>}, {pipeline_mode = #tpu.pipeline_mode<synchronous>, transform_indices = @transform_5, window_bounds = array<i64: 2, 32, 96>}, {pipeline_mode = #tpu.pipeline_mode<synchronous>, transform_indices = @transform_6, window_bounds = array<i64: 2, 32, 32>}, {pipeline_mode = #tpu.pipeline_mode<synchronous>, transform_indices = @transform_7, window_bounds = array<i64: 2, 32, 128>}, {pipeline_mode = #tpu.pipeline_mode<synchronous>, transform_indices = @transform_8, window_bounds = array<i64: 2, 128, 32>}, {pipeline_mode = #tpu.pipeline_mode<synchronous>, transform_indices = @transform_9, window_bounds = array<i64: 2, 16, 128>}, {transform_indices = @transform_10, window_bounds = array<i64: 1, 1, 128>}]} {
    %c0 = arith.constant 0 : index
    %c0_0 = arith.constant 0 : index
    %0 = vector.load %arg5[%c0, %c0_0] : memref<8x128xf32, #tpu.memory_space<vmem>>, vector<8x128xf32>
    %1 = vector.extract_strided_slice %0 {offsets = [0, 0], sizes = [1, 32], strides = [1, 1]} : vector<8x128xf32> to vector<1x32xf32>
    %2 = vector.extract_strided_slice %0 {offsets = [1, 0], sizes = [1, 32], strides = [1, 1]} : vector<8x128xf32> to vector<1x32xf32>
    %3 = vector.extract_strided_slice %0 {offsets = [2, 0], sizes = [1, 32], strides = [1, 1]} : vector<8x128xf32> to vector<1x32xf32>
    %4 = vector.extract_strided_slice %0 {offsets = [3, 0], sizes = [1, 32], strides = [1, 1]} : vector<8x128xf32> to vector<1x32xf32>
    %5 = vector.extract_strided_slice %0 {offsets = [4, 0], sizes = [1, 128], strides = [1, 1]} : vector<8x128xf32> to vector<1x128xf32>
    %c0_1 = arith.constant 0 : index
    %c0_2 = arith.constant 0 : index
    %c0_3 = arith.constant 0 : index
    %6 = vector.load %arg1[%c0_1, %c0_2, %c0_3] : memref<1x4x768xf32, #tpu.memory_space<vmem>>, vector<1x4x768xf32>
    %7 = vector.shape_cast %6 : vector<1x4x768xf32> to vector<4x768xf32>
    %c0_4 = arith.constant 0 : index
    %c0_5 = arith.constant 0 : index
    %8 = vector.load %arg2[%c0_4, %c0_5] : memref<768x32xf32, #tpu.memory_space<vmem>>, vector<768x32xf32>
    %cst = arith.constant dense<0.000000e+00> : vector<4x32xf32>
    %9 = tpu.matmul %7, %8, %cst {dimension_numbers = #tpu.dot_dimension_numbers<[1], [0], [0], [1], [0, 0, 1, 1], [], []>} : vector<4x768xf32>, vector<768x32xf32>, vector<4x32xf32> -> vector<4x32xf32>
    %10 = vector.broadcast %1 : vector<1x32xf32> to vector<4x32xf32>
    %11 = arith.addf %9, %10 : vector<4x32xf32>
    %12 = tpu.concatenate %2, %11 in 0 : vector<1x32xf32>, vector<4x32xf32> -> vector<5x32xf32>
    %c0_6 = arith.constant 0 : index
    %c0_7 = arith.constant 0 : index
    %13 = vector.load %arg3[%c0_6, %c0_7] : memref<5x32xf32, #tpu.memory_space<vmem>>, vector<5x32xf32>
    %14 = arith.addf %12, %13 : vector<5x32xf32>
    %c0_8 = arith.constant 0 : index
    %c0_9 = arith.constant 0 : index
    %c0_10 = arith.constant 0 : index
    %15 = vector.load %arg10[%c0_8, %c0_9, %c0_10] : memref<2x16x128xf32, #tpu.memory_space<vmem>>, vector<1x16x128xf32>
    %16 = vector.shape_cast %15 : vector<1x16x128xf32> to vector<16x128xf32>
    %17 = vector.extract_strided_slice %16 {offsets = [0, 0], sizes = [1, 32], strides = [1, 1]} : vector<16x128xf32> to vector<1x32xf32>
    %18 = vector.extract_strided_slice %16 {offsets = [1, 0], sizes = [1, 32], strides = [1, 1]} : vector<16x128xf32> to vector<1x32xf32>
    %19 = vector.extract_strided_slice %16 {offsets = [2, 0], sizes = [1, 96], strides = [1, 1]} : vector<16x128xf32> to vector<1x96xf32>
    %20 = vector.extract_strided_slice %16 {offsets = [3, 0], sizes = [1, 32], strides = [1, 1]} : vector<16x128xf32> to vector<1x32xf32>
    %21 = vector.extract_strided_slice %16 {offsets = [4, 0], sizes = [1, 32], strides = [1, 1]} : vector<16x128xf32> to vector<1x32xf32>
    %22 = vector.extract_strided_slice %16 {offsets = [5, 0], sizes = [1, 32], strides = [1, 1]} : vector<16x128xf32> to vector<1x32xf32>
    %23 = vector.extract_strided_slice %16 {offsets = [6, 0], sizes = [1, 32], strides = [1, 1]} : vector<16x128xf32> to vector<1x32xf32>
    %24 = vector.extract_strided_slice %16 {offsets = [7, 0], sizes = [1, 128], strides = [1, 1]} : vector<16x128xf32> to vector<1x128xf32>
    %25 = vector.extract_strided_slice %16 {offsets = [8, 0], sizes = [1, 32], strides = [1, 1]} : vector<16x128xf32> to vector<1x32xf32>
    %26 = vector.extract_strided_slice %16 {offsets = [9, 0], sizes = [1, 32], strides = [1, 1]} : vector<16x128xf32> to vector<1x32xf32>
    %cst_11 = arith.constant dense<0.000000e+00> : vector<5xf32>
    %27 = vector.multi_reduction <add>, %14, %cst_11 [1] : vector<5x32xf32> to vector<5xf32>
    %28 = vector.shape_cast %27 : vector<5xf32> to vector<5x1xf32>
    %cst_12 = arith.constant 3.200000e+01 : f32
    %29 = vector.broadcast %cst_12 : f32 to vector<5x1xf32>
    %30 = arith.divf %28, %29 : vector<5x1xf32>
    %31 = vector.broadcast %30 : vector<5x1xf32> to vector<5x32xf32>
    %32 = arith.subf %14, %31 : vector<5x32xf32>
    %33 = arith.mulf %32, %32 : vector<5x32xf32>
    %cst_13 = arith.constant dense<0.000000e+00> : vector<5xf32>
    %34 = vector.multi_reduction <add>, %33, %cst_13 [1] : vector<5x32xf32> to vector<5xf32>
    %35 = vector.shape_cast %34 : vector<5xf32> to vector<5x1xf32>
    %cst_14 = arith.constant 3.200000e+01 : f32
    %36 = vector.broadcast %cst_14 : f32 to vector<5x1xf32>
    %37 = arith.divf %35, %36 : vector<5x1xf32>
    %cst_15 = arith.constant 9.99999997E-7 : f32
    %38 = vector.broadcast %cst_15 : f32 to vector<5x1xf32>
    %39 = arith.addf %37, %38 : vector<5x1xf32>
    %40 = math.rsqrt %39 : vector<5x1xf32>
    %41 = vector.broadcast %40 : vector<5x1xf32> to vector<5x32xf32>
    %42 = arith.mulf %32, %41 : vector<5x32xf32>
    %43 = vector.broadcast %17 : vector<1x32xf32> to vector<5x32xf32>
    %44 = arith.mulf %42, %43 : vector<5x32xf32>
    %45 = vector.broadcast %18 : vector<1x32xf32> to vector<5x32xf32>
    %46 = arith.addf %44, %45 : vector<5x32xf32>
    %c0_16 = arith.constant 0 : index
    %c0_17 = arith.constant 0 : index
    %c0_18 = arith.constant 0 : index
    %47 = vector.load %arg6[%c0_16, %c0_17, %c0_18] : memref<2x32x96xf32, #tpu.memory_space<vmem>>, vector<1x32x96xf32>
    %48 = vector.shape_cast %47 : vector<1x32x96xf32> to vector<32x96xf32>
    %cst_19 = arith.constant dense<0.000000e+00> : vector<5x96xf32>
    %49 = tpu.matmul %46, %48, %cst_19 {dimension_numbers = #tpu.dot_dimension_numbers<[1], [0], [0], [1], [0, 0, 1, 1], [], []>} : vector<5x32xf32>, vector<32x96xf32>, vector<5x96xf32> -> vector<5x96xf32>
    %50 = vector.broadcast %19 : vector<1x96xf32> to vector<5x96xf32>
    %51 = arith.addf %49, %50 : vector<5x96xf32>
    %52 = vector.extract_strided_slice %51 {offsets = [0, 0], sizes = [5, 8], strides = [1, 1]} : vector<5x96xf32> to vector<5x8xf32>
    %cst_20 = arith.constant 0.353553385 : f32
    %53 = vector.broadcast %cst_20 : f32 to vector<5x8xf32>
    %54 = arith.mulf %52, %53 : vector<5x8xf32>
    %55 = vector.extract_strided_slice %51 {offsets = [0, 32], sizes = [5, 8], strides = [1, 1]} : vector<5x96xf32> to vector<5x8xf32>
    %56 = vector.extract_strided_slice %51 {offsets = [0, 64], sizes = [5, 8], strides = [1, 1]} : vector<5x96xf32> to vector<5x8xf32>
    %cst_21 = arith.constant dense<0.000000e+00> : vector<5x5xf32>
    %57 = tpu.matmul %54, %55, %cst_21 {dimension_numbers = #tpu.dot_dimension_numbers<[1], [1], [0], [0], [0, 0, 1, 0], [], []>} : vector<5x8xf32>, vector<5x8xf32>, vector<5x5xf32> -> vector<5x5xf32>
    %cst_22 = arith.constant dense<0xFF800000> : vector<5xf32>
    %58 = vector.multi_reduction <maximumf>, %57, %cst_22 [1] : vector<5x5xf32> to vector<5xf32>
    %59 = vector.shape_cast %58 : vector<5xf32> to vector<5x1xf32>
    %60 = vector.broadcast %59 : vector<5x1xf32> to vector<5x5xf32>
    %61 = arith.subf %57, %60 : vector<5x5xf32>
    %62 = math.exp %61 : vector<5x5xf32>
    %cst_23 = arith.constant dense<0.000000e+00> : vector<5xf32>
    %63 = vector.multi_reduction <add>, %62, %cst_23 [1] : vector<5x5xf32> to vector<5xf32>
    %64 = vector.shape_cast %63 : vector<5xf32> to vector<5x1xf32>
    %65 = tpu.reciprocal %64 {approx = true} : vector<5x1xf32> -> vector<5x1xf32>
    %66 = vector.broadcast %65 : vector<5x1xf32> to vector<5x5xf32>
    %67 = arith.mulf %62, %66 : vector<5x5xf32>
    %cst_24 = arith.constant dense<0.000000e+00> : vector<5x8xf32>
    %68 = tpu.matmul %67, %56, %cst_24 {dimension_numbers = #tpu.dot_dimension_numbers<[1], [0], [0], [1], [0, 0, 1, 1], [], []>} : vector<5x5xf32>, vector<5x8xf32>, vector<5x8xf32> -> vector<5x8xf32>
    %69 = vector.extract_strided_slice %51 {offsets = [0, 8], sizes = [5, 8], strides = [1, 1]} : vector<5x96xf32> to vector<5x8xf32>
    %cst_25 = arith.constant 0.353553385 : f32
    %70 = vector.broadcast %cst_25 : f32 to vector<5x8xf32>
    %71 = arith.mulf %69, %70 : vector<5x8xf32>
    %72 = vector.extract_strided_slice %51 {offsets = [0, 40], sizes = [5, 8], strides = [1, 1]} : vector<5x96xf32> to vector<5x8xf32>
    %73 = vector.extract_strided_slice %51 {offsets = [0, 72], sizes = [5, 8], strides = [1, 1]} : vector<5x96xf32> to vector<5x8xf32>
    %cst_26 = arith.constant dense<0.000000e+00> : vector<5x5xf32>
    %74 = tpu.matmul %71, %72, %cst_26 {dimension_numbers = #tpu.dot_dimension_numbers<[1], [1], [0], [0], [0, 0, 1, 0], [], []>} : vector<5x8xf32>, vector<5x8xf32>, vector<5x5xf32> -> vector<5x5xf32>
    %cst_27 = arith.constant dense<0xFF800000> : vector<5xf32>
    %75 = vector.multi_reduction <maximumf>, %74, %cst_27 [1] : vector<5x5xf32> to vector<5xf32>
    %76 = vector.shape_cast %75 : vector<5xf32> to vector<5x1xf32>
    %77 = vector.broadcast %76 : vector<5x1xf32> to vector<5x5xf32>
    %78 = arith.subf %74, %77 : vector<5x5xf32>
    %79 = math.exp %78 : vector<5x5xf32>
    %cst_28 = arith.constant dense<0.000000e+00> : vector<5xf32>
    %80 = vector.multi_reduction <add>, %79, %cst_28 [1] : vector<5x5xf32> to vector<5xf32>
    %81 = vector.shape_cast %80 : vector<5xf32> to vector<5x1xf32>
    %82 = tpu.reciprocal %81 {approx = true} : vector<5x1xf32> -> vector<5x1xf32>
    %83 = vector.broadcast %82 : vector<5x1xf32> to vector<5x5xf32>
    %84 = arith.mulf %79, %83 : vector<5x5xf32>
    %cst_29 = arith.constant dense<0.000000e+00> : vector<5x8xf32>
    %85 = tpu.matmul %84, %73, %cst_29 {dimension_numbers = #tpu.dot_dimension_numbers<[1], [0], [0], [1], [0, 0, 1, 1], [], []>} : vector<5x5xf32>, vector<5x8xf32>, vector<5x8xf32> -> vector<5x8xf32>
    %86 = vector.extract_strided_slice %51 {offsets = [0, 16], sizes = [5, 8], strides = [1, 1]} : vector<5x96xf32> to vector<5x8xf32>
    %cst_30 = arith.constant 0.353553385 : f32
    %87 = vector.broadcast %cst_30 : f32 to vector<5x8xf32>
    %88 = arith.mulf %86, %87 : vector<5x8xf32>
    %89 = vector.extract_strided_slice %51 {offsets = [0, 48], sizes = [5, 8], strides = [1, 1]} : vector<5x96xf32> to vector<5x8xf32>
    %90 = vector.extract_strided_slice %51 {offsets = [0, 80], sizes = [5, 8], strides = [1, 1]} : vector<5x96xf32> to vector<5x8xf32>
    %cst_31 = arith.constant dense<0.000000e+00> : vector<5x5xf32>
    %91 = tpu.matmul %88, %89, %cst_31 {dimension_numbers = #tpu.dot_dimension_numbers<[1], [1], [0], [0], [0, 0, 1, 0], [], []>} : vector<5x8xf32>, vector<5x8xf32>, vector<5x5xf32> -> vector<5x5xf32>
    %cst_32 = arith.constant dense<0xFF800000> : vector<5xf32>
    %92 = vector.multi_reduction <maximumf>, %91, %cst_32 [1] : vector<5x5xf32> to vector<5xf32>
    %93 = vector.shape_cast %92 : vector<5xf32> to vector<5x1xf32>
    %94 = vector.broadcast %93 : vector<5x1xf32> to vector<5x5xf32>
    %95 = arith.subf %91, %94 : vector<5x5xf32>
    %96 = math.exp %95 : vector<5x5xf32>
    %cst_33 = arith.constant dense<0.000000e+00> : vector<5xf32>
    %97 = vector.multi_reduction <add>, %96, %cst_33 [1] : vector<5x5xf32> to vector<5xf32>
    %98 = vector.shape_cast %97 : vector<5xf32> to vector<5x1xf32>
    %99 = tpu.reciprocal %98 {approx = true} : vector<5x1xf32> -> vector<5x1xf32>
    %100 = vector.broadcast %99 : vector<5x1xf32> to vector<5x5xf32>
    %101 = arith.mulf %96, %100 : vector<5x5xf32>
    %cst_34 = arith.constant dense<0.000000e+00> : vector<5x8xf32>
    %102 = tpu.matmul %101, %90, %cst_34 {dimension_numbers = #tpu.dot_dimension_numbers<[1], [0], [0], [1], [0, 0, 1, 1], [], []>} : vector<5x5xf32>, vector<5x8xf32>, vector<5x8xf32> -> vector<5x8xf32>
    %103 = vector.extract_strided_slice %51 {offsets = [0, 24], sizes = [5, 8], strides = [1, 1]} : vector<5x96xf32> to vector<5x8xf32>
    %cst_35 = arith.constant 0.353553385 : f32
    %104 = vector.broadcast %cst_35 : f32 to vector<5x8xf32>
    %105 = arith.mulf %103, %104 : vector<5x8xf32>
    %106 = vector.extract_strided_slice %51 {offsets = [0, 56], sizes = [5, 8], strides = [1, 1]} : vector<5x96xf32> to vector<5x8xf32>
    %107 = vector.extract_strided_slice %51 {offsets = [0, 88], sizes = [5, 8], strides = [1, 1]} : vector<5x96xf32> to vector<5x8xf32>
    %cst_36 = arith.constant dense<0.000000e+00> : vector<5x5xf32>
    %108 = tpu.matmul %105, %106, %cst_36 {dimension_numbers = #tpu.dot_dimension_numbers<[1], [1], [0], [0], [0, 0, 1, 0], [], []>} : vector<5x8xf32>, vector<5x8xf32>, vector<5x5xf32> -> vector<5x5xf32>
    %cst_37 = arith.constant dense<0xFF800000> : vector<5xf32>
    %109 = vector.multi_reduction <maximumf>, %108, %cst_37 [1] : vector<5x5xf32> to vector<5xf32>
    %110 = vector.shape_cast %109 : vector<5xf32> to vector<5x1xf32>
    %111 = vector.broadcast %110 : vector<5x1xf32> to vector<5x5xf32>
    %112 = arith.subf %108, %111 : vector<5x5xf32>
    %113 = math.exp %112 : vector<5x5xf32>
    %cst_38 = arith.constant dense<0.000000e+00> : vector<5xf32>
    %114 = vector.multi_reduction <add>, %113, %cst_38 [1] : vector<5x5xf32> to vector<5xf32>
    %115 = vector.shape_cast %114 : vector<5xf32> to vector<5x1xf32>
    %116 = tpu.reciprocal %115 {approx = true} : vector<5x1xf32> -> vector<5x1xf32>
    %117 = vector.broadcast %116 : vector<5x1xf32> to vector<5x5xf32>
    %118 = arith.mulf %113, %117 : vector<5x5xf32>
    %cst_39 = arith.constant dense<0.000000e+00> : vector<5x8xf32>
    %119 = tpu.matmul %118, %107, %cst_39 {dimension_numbers = #tpu.dot_dimension_numbers<[1], [0], [0], [1], [0, 0, 1, 1], [], []>} : vector<5x5xf32>, vector<5x8xf32>, vector<5x8xf32> -> vector<5x8xf32>
    %120 = tpu.concatenate %68, %85, %102, %119 in 1 : vector<5x8xf32>, vector<5x8xf32>, vector<5x8xf32>, vector<5x8xf32> -> vector<5x32xf32>
    %c0_40 = arith.constant 0 : index
    %c0_41 = arith.constant 0 : index
    %c0_42 = arith.constant 0 : index
    %121 = vector.load %arg7[%c0_40, %c0_41, %c0_42] : memref<2x32x32xf32, #tpu.memory_space<vmem>>, vector<1x32x32xf32>
    %122 = vector.shape_cast %121 : vector<1x32x32xf32> to vector<32x32xf32>
    %cst_43 = arith.constant dense<0.000000e+00> : vector<5x32xf32>
    %123 = tpu.matmul %120, %122, %cst_43 {dimension_numbers = #tpu.dot_dimension_numbers<[1], [0], [0], [1], [0, 0, 1, 1], [], []>} : vector<5x32xf32>, vector<32x32xf32>, vector<5x32xf32> -> vector<5x32xf32>
    %124 = vector.broadcast %20 : vector<1x32xf32> to vector<5x32xf32>
    %125 = arith.addf %123, %124 : vector<5x32xf32>
    %126 = vector.broadcast %21 : vector<1x32xf32> to vector<5x32xf32>
    %127 = arith.mulf %126, %125 : vector<5x32xf32>
    %128 = arith.addf %14, %127 : vector<5x32xf32>
    %cst_44 = arith.constant dense<0.000000e+00> : vector<5xf32>
    %129 = vector.multi_reduction <add>, %128, %cst_44 [1] : vector<5x32xf32> to vector<5xf32>
    %130 = vector.shape_cast %129 : vector<5xf32> to vector<5x1xf32>
    %cst_45 = arith.constant 3.200000e+01 : f32
    %131 = vector.broadcast %cst_45 : f32 to vector<5x1xf32>
    %132 = arith.divf %130, %131 : vector<5x1xf32>
    %133 = vector.broadcast %132 : vector<5x1xf32> to vector<5x32xf32>
    %134 = arith.subf %128, %133 : vector<5x32xf32>
    %135 = arith.mulf %134, %134 : vector<5x32xf32>
    %cst_46 = arith.constant dense<0.000000e+00> : vector<5xf32>
    %136 = vector.multi_reduction <add>, %135, %cst_46 [1] : vector<5x32xf32> to vector<5xf32>
    %137 = vector.shape_cast %136 : vector<5xf32> to vector<5x1xf32>
    %cst_47 = arith.constant 3.200000e+01 : f32
    %138 = vector.broadcast %cst_47 : f32 to vector<5x1xf32>
    %139 = arith.divf %137, %138 : vector<5x1xf32>
    %cst_48 = arith.constant 9.99999997E-7 : f32
    %140 = vector.broadcast %cst_48 : f32 to vector<5x1xf32>
    %141 = arith.addf %139, %140 : vector<5x1xf32>
    %142 = math.rsqrt %141 : vector<5x1xf32>
    %143 = vector.broadcast %142 : vector<5x1xf32> to vector<5x32xf32>
    %144 = arith.mulf %134, %143 : vector<5x32xf32>
    %145 = vector.broadcast %22 : vector<1x32xf32> to vector<5x32xf32>
    %146 = arith.mulf %144, %145 : vector<5x32xf32>
    %147 = vector.broadcast %23 : vector<1x32xf32> to vector<5x32xf32>
    %148 = arith.addf %146, %147 : vector<5x32xf32>
    %c0_49 = arith.constant 0 : index
    %c0_50 = arith.constant 0 : index
    %c0_51 = arith.constant 0 : index
    %149 = vector.load %arg8[%c0_49, %c0_50, %c0_51] : memref<2x32x128xf32, #tpu.memory_space<vmem>>, vector<1x32x128xf32>
    %150 = vector.shape_cast %149 : vector<1x32x128xf32> to vector<32x128xf32>
    %cst_52 = arith.constant dense<0.000000e+00> : vector<5x128xf32>
    %151 = tpu.matmul %148, %150, %cst_52 {dimension_numbers = #tpu.dot_dimension_numbers<[1], [0], [0], [1], [0, 0, 1, 1], [], []>} : vector<5x32xf32>, vector<32x128xf32>, vector<5x128xf32> -> vector<5x128xf32>
    %152 = vector.broadcast %24 : vector<1x128xf32> to vector<5x128xf32>
    %153 = arith.addf %151, %152 : vector<5x128xf32>
    %cst_53 = arith.constant 5.000000e-01 : f32
    %154 = vector.broadcast %cst_53 : f32 to vector<5x128xf32>
    %155 = arith.mulf %154, %153 : vector<5x128xf32>
    %cst_54 = arith.constant 4.471500e-02 : f32
    %156 = vector.broadcast %cst_54 : f32 to vector<5x128xf32>
    %157 = arith.mulf %156, %153 : vector<5x128xf32>
    %158 = arith.mulf %157, %153 : vector<5x128xf32>
    %159 = arith.mulf %158, %153 : vector<5x128xf32>
    %160 = arith.addf %153, %159 : vector<5x128xf32>
    %cst_55 = arith.constant 0.797884583 : f32
    %161 = vector.broadcast %cst_55 : f32 to vector<5x128xf32>
    %162 = arith.mulf %161, %160 : vector<5x128xf32>
    %163 = math.tanh %162 : vector<5x128xf32>
    %cst_56 = arith.constant 1.000000e+00 : f32
    %164 = vector.broadcast %cst_56 : f32 to vector<5x128xf32>
    %165 = arith.addf %164, %163 : vector<5x128xf32>
    %166 = arith.mulf %155, %165 : vector<5x128xf32>
    %c0_57 = arith.constant 0 : index
    %c0_58 = arith.constant 0 : index
    %c0_59 = arith.constant 0 : index
    %167 = vector.load %arg9[%c0_57, %c0_58, %c0_59] : memref<2x128x32xf32, #tpu.memory_space<vmem>>, vector<1x128x32xf32>
    %168 = vector.shape_cast %167 : vector<1x128x32xf32> to vector<128x32xf32>
    %cst_60 = arith.constant dense<0.000000e+00> : vector<5x32xf32>
    %169 = tpu.matmul %166, %168, %cst_60 {dimension_numbers = #tpu.dot_dimension_numbers<[1], [0], [0], [1], [0, 0, 1, 1], [], []>} : vector<5x128xf32>, vector<128x32xf32>, vector<5x32xf32> -> vector<5x32xf32>
    %170 = vector.broadcast %25 : vector<1x32xf32> to vector<5x32xf32>
    %171 = arith.addf %169, %170 : vector<5x32xf32>
    %172 = vector.broadcast %26 : vector<1x32xf32> to vector<5x32xf32>
    %173 = arith.mulf %172, %171 : vector<5x32xf32>
    %174 = arith.addf %128, %173 : vector<5x32xf32>
    %c1 = arith.constant 1 : index
    %c0_61 = arith.constant 0 : index
    %c0_62 = arith.constant 0 : index
    %175 = vector.load %arg10[%c1, %c0_61, %c0_62] : memref<2x16x128xf32, #tpu.memory_space<vmem>>, vector<1x16x128xf32>
    %176 = vector.shape_cast %175 : vector<1x16x128xf32> to vector<16x128xf32>
    %177 = vector.extract_strided_slice %176 {offsets = [0, 0], sizes = [1, 32], strides = [1, 1]} : vector<16x128xf32> to vector<1x32xf32>
    %178 = vector.extract_strided_slice %176 {offsets = [1, 0], sizes = [1, 32], strides = [1, 1]} : vector<16x128xf32> to vector<1x32xf32>
    %179 = vector.extract_strided_slice %176 {offsets = [2, 0], sizes = [1, 96], strides = [1, 1]} : vector<16x128xf32> to vector<1x96xf32>
    %180 = vector.extract_strided_slice %176 {offsets = [3, 0], sizes = [1, 32], strides = [1, 1]} : vector<16x128xf32> to vector<1x32xf32>
    %181 = vector.extract_strided_slice %176 {offsets = [4, 0], sizes = [1, 32], strides = [1, 1]} : vector<16x128xf32> to vector<1x32xf32>
    %182 = vector.extract_strided_slice %176 {offsets = [5, 0], sizes = [1, 32], strides = [1, 1]} : vector<16x128xf32> to vector<1x32xf32>
    %183 = vector.extract_strided_slice %176 {offsets = [6, 0], sizes = [1, 32], strides = [1, 1]} : vector<16x128xf32> to vector<1x32xf32>
    %184 = vector.extract_strided_slice %176 {offsets = [7, 0], sizes = [1, 128], strides = [1, 1]} : vector<16x128xf32> to vector<1x128xf32>
    %185 = vector.extract_strided_slice %176 {offsets = [8, 0], sizes = [1, 32], strides = [1, 1]} : vector<16x128xf32> to vector<1x32xf32>
    %186 = vector.extract_strided_slice %176 {offsets = [9, 0], sizes = [1, 32], strides = [1, 1]} : vector<16x128xf32> to vector<1x32xf32>
    %cst_63 = arith.constant dense<0.000000e+00> : vector<5xf32>
    %187 = vector.multi_reduction <add>, %174, %cst_63 [1] : vector<5x32xf32> to vector<5xf32>
    %188 = vector.shape_cast %187 : vector<5xf32> to vector<5x1xf32>
    %cst_64 = arith.constant 3.200000e+01 : f32
    %189 = vector.broadcast %cst_64 : f32 to vector<5x1xf32>
    %190 = arith.divf %188, %189 : vector<5x1xf32>
    %191 = vector.broadcast %190 : vector<5x1xf32> to vector<5x32xf32>
    %192 = arith.subf %174, %191 : vector<5x32xf32>
    %193 = arith.mulf %192, %192 : vector<5x32xf32>
    %cst_65 = arith.constant dense<0.000000e+00> : vector<5xf32>
    %194 = vector.multi_reduction <add>, %193, %cst_65 [1] : vector<5x32xf32> to vector<5xf32>
    %195 = vector.shape_cast %194 : vector<5xf32> to vector<5x1xf32>
    %cst_66 = arith.constant 3.200000e+01 : f32
    %196 = vector.broadcast %cst_66 : f32 to vector<5x1xf32>
    %197 = arith.divf %195, %196 : vector<5x1xf32>
    %cst_67 = arith.constant 9.99999997E-7 : f32
    %198 = vector.broadcast %cst_67 : f32 to vector<5x1xf32>
    %199 = arith.addf %197, %198 : vector<5x1xf32>
    %200 = math.rsqrt %199 : vector<5x1xf32>
    %201 = vector.broadcast %200 : vector<5x1xf32> to vector<5x32xf32>
    %202 = arith.mulf %192, %201 : vector<5x32xf32>
    %203 = vector.broadcast %177 : vector<1x32xf32> to vector<5x32xf32>
    %204 = arith.mulf %202, %203 : vector<5x32xf32>
    %205 = vector.broadcast %178 : vector<1x32xf32> to vector<5x32xf32>
    %206 = arith.addf %204, %205 : vector<5x32xf32>
    %c1_68 = arith.constant 1 : index
    %c0_69 = arith.constant 0 : index
    %c0_70 = arith.constant 0 : index
    %207 = vector.load %arg6[%c1_68, %c0_69, %c0_70] : memref<2x32x96xf32, #tpu.memory_space<vmem>>, vector<1x32x96xf32>
    %208 = vector.shape_cast %207 : vector<1x32x96xf32> to vector<32x96xf32>
    %cst_71 = arith.constant dense<0.000000e+00> : vector<5x96xf32>
    %209 = tpu.matmul %206, %208, %cst_71 {dimension_numbers = #tpu.dot_dimension_numbers<[1], [0], [0], [1], [0, 0, 1, 1], [], []>} : vector<5x32xf32>, vector<32x96xf32>, vector<5x96xf32> -> vector<5x96xf32>
    %210 = vector.broadcast %179 : vector<1x96xf32> to vector<5x96xf32>
    %211 = arith.addf %209, %210 : vector<5x96xf32>
    %212 = vector.extract_strided_slice %211 {offsets = [0, 0], sizes = [5, 8], strides = [1, 1]} : vector<5x96xf32> to vector<5x8xf32>
    %cst_72 = arith.constant 0.353553385 : f32
    %213 = vector.broadcast %cst_72 : f32 to vector<5x8xf32>
    %214 = arith.mulf %212, %213 : vector<5x8xf32>
    %215 = vector.extract_strided_slice %211 {offsets = [0, 32], sizes = [5, 8], strides = [1, 1]} : vector<5x96xf32> to vector<5x8xf32>
    %216 = vector.extract_strided_slice %211 {offsets = [0, 64], sizes = [5, 8], strides = [1, 1]} : vector<5x96xf32> to vector<5x8xf32>
    %cst_73 = arith.constant dense<0.000000e+00> : vector<5x5xf32>
    %217 = tpu.matmul %214, %215, %cst_73 {dimension_numbers = #tpu.dot_dimension_numbers<[1], [1], [0], [0], [0, 0, 1, 0], [], []>} : vector<5x8xf32>, vector<5x8xf32>, vector<5x5xf32> -> vector<5x5xf32>
    %cst_74 = arith.constant dense<0xFF800000> : vector<5xf32>
    %218 = vector.multi_reduction <maximumf>, %217, %cst_74 [1] : vector<5x5xf32> to vector<5xf32>
    %219 = vector.shape_cast %218 : vector<5xf32> to vector<5x1xf32>
    %220 = vector.broadcast %219 : vector<5x1xf32> to vector<5x5xf32>
    %221 = arith.subf %217, %220 : vector<5x5xf32>
    %222 = math.exp %221 : vector<5x5xf32>
    %cst_75 = arith.constant dense<0.000000e+00> : vector<5xf32>
    %223 = vector.multi_reduction <add>, %222, %cst_75 [1] : vector<5x5xf32> to vector<5xf32>
    %224 = vector.shape_cast %223 : vector<5xf32> to vector<5x1xf32>
    %225 = tpu.reciprocal %224 {approx = true} : vector<5x1xf32> -> vector<5x1xf32>
    %226 = vector.broadcast %225 : vector<5x1xf32> to vector<5x5xf32>
    %227 = arith.mulf %222, %226 : vector<5x5xf32>
    %cst_76 = arith.constant dense<0.000000e+00> : vector<5x8xf32>
    %228 = tpu.matmul %227, %216, %cst_76 {dimension_numbers = #tpu.dot_dimension_numbers<[1], [0], [0], [1], [0, 0, 1, 1], [], []>} : vector<5x5xf32>, vector<5x8xf32>, vector<5x8xf32> -> vector<5x8xf32>
    %229 = vector.extract_strided_slice %211 {offsets = [0, 8], sizes = [5, 8], strides = [1, 1]} : vector<5x96xf32> to vector<5x8xf32>
    %cst_77 = arith.constant 0.353553385 : f32
    %230 = vector.broadcast %cst_77 : f32 to vector<5x8xf32>
    %231 = arith.mulf %229, %230 : vector<5x8xf32>
    %232 = vector.extract_strided_slice %211 {offsets = [0, 40], sizes = [5, 8], strides = [1, 1]} : vector<5x96xf32> to vector<5x8xf32>
    %233 = vector.extract_strided_slice %211 {offsets = [0, 72], sizes = [5, 8], strides = [1, 1]} : vector<5x96xf32> to vector<5x8xf32>
    %cst_78 = arith.constant dense<0.000000e+00> : vector<5x5xf32>
    %234 = tpu.matmul %231, %232, %cst_78 {dimension_numbers = #tpu.dot_dimension_numbers<[1], [1], [0], [0], [0, 0, 1, 0], [], []>} : vector<5x8xf32>, vector<5x8xf32>, vector<5x5xf32> -> vector<5x5xf32>
    %cst_79 = arith.constant dense<0xFF800000> : vector<5xf32>
    %235 = vector.multi_reduction <maximumf>, %234, %cst_79 [1] : vector<5x5xf32> to vector<5xf32>
    %236 = vector.shape_cast %235 : vector<5xf32> to vector<5x1xf32>
    %237 = vector.broadcast %236 : vector<5x1xf32> to vector<5x5xf32>
    %238 = arith.subf %234, %237 : vector<5x5xf32>
    %239 = math.exp %238 : vector<5x5xf32>
    %cst_80 = arith.constant dense<0.000000e+00> : vector<5xf32>
    %240 = vector.multi_reduction <add>, %239, %cst_80 [1] : vector<5x5xf32> to vector<5xf32>
    %241 = vector.shape_cast %240 : vector<5xf32> to vector<5x1xf32>
    %242 = tpu.reciprocal %241 {approx = true} : vector<5x1xf32> -> vector<5x1xf32>
    %243 = vector.broadcast %242 : vector<5x1xf32> to vector<5x5xf32>
    %244 = arith.mulf %239, %243 : vector<5x5xf32>
    %cst_81 = arith.constant dense<0.000000e+00> : vector<5x8xf32>
    %245 = tpu.matmul %244, %233, %cst_81 {dimension_numbers = #tpu.dot_dimension_numbers<[1], [0], [0], [1], [0, 0, 1, 1], [], []>} : vector<5x5xf32>, vector<5x8xf32>, vector<5x8xf32> -> vector<5x8xf32>
    %246 = vector.extract_strided_slice %211 {offsets = [0, 16], sizes = [5, 8], strides = [1, 1]} : vector<5x96xf32> to vector<5x8xf32>
    %cst_82 = arith.constant 0.353553385 : f32
    %247 = vector.broadcast %cst_82 : f32 to vector<5x8xf32>
    %248 = arith.mulf %246, %247 : vector<5x8xf32>
    %249 = vector.extract_strided_slice %211 {offsets = [0, 48], sizes = [5, 8], strides = [1, 1]} : vector<5x96xf32> to vector<5x8xf32>
    %250 = vector.extract_strided_slice %211 {offsets = [0, 80], sizes = [5, 8], strides = [1, 1]} : vector<5x96xf32> to vector<5x8xf32>
    %cst_83 = arith.constant dense<0.000000e+00> : vector<5x5xf32>
    %251 = tpu.matmul %248, %249, %cst_83 {dimension_numbers = #tpu.dot_dimension_numbers<[1], [1], [0], [0], [0, 0, 1, 0], [], []>} : vector<5x8xf32>, vector<5x8xf32>, vector<5x5xf32> -> vector<5x5xf32>
    %cst_84 = arith.constant dense<0xFF800000> : vector<5xf32>
    %252 = vector.multi_reduction <maximumf>, %251, %cst_84 [1] : vector<5x5xf32> to vector<5xf32>
    %253 = vector.shape_cast %252 : vector<5xf32> to vector<5x1xf32>
    %254 = vector.broadcast %253 : vector<5x1xf32> to vector<5x5xf32>
    %255 = arith.subf %251, %254 : vector<5x5xf32>
    %256 = math.exp %255 : vector<5x5xf32>
    %cst_85 = arith.constant dense<0.000000e+00> : vector<5xf32>
    %257 = vector.multi_reduction <add>, %256, %cst_85 [1] : vector<5x5xf32> to vector<5xf32>
    %258 = vector.shape_cast %257 : vector<5xf32> to vector<5x1xf32>
    %259 = tpu.reciprocal %258 {approx = true} : vector<5x1xf32> -> vector<5x1xf32>
    %260 = vector.broadcast %259 : vector<5x1xf32> to vector<5x5xf32>
    %261 = arith.mulf %256, %260 : vector<5x5xf32>
    %cst_86 = arith.constant dense<0.000000e+00> : vector<5x8xf32>
    %262 = tpu.matmul %261, %250, %cst_86 {dimension_numbers = #tpu.dot_dimension_numbers<[1], [0], [0], [1], [0, 0, 1, 1], [], []>} : vector<5x5xf32>, vector<5x8xf32>, vector<5x8xf32> -> vector<5x8xf32>
    %263 = vector.extract_strided_slice %211 {offsets = [0, 24], sizes = [5, 8], strides = [1, 1]} : vector<5x96xf32> to vector<5x8xf32>
    %cst_87 = arith.constant 0.353553385 : f32
    %264 = vector.broadcast %cst_87 : f32 to vector<5x8xf32>
    %265 = arith.mulf %263, %264 : vector<5x8xf32>
    %266 = vector.extract_strided_slice %211 {offsets = [0, 56], sizes = [5, 8], strides = [1, 1]} : vector<5x96xf32> to vector<5x8xf32>
    %267 = vector.extract_strided_slice %211 {offsets = [0, 88], sizes = [5, 8], strides = [1, 1]} : vector<5x96xf32> to vector<5x8xf32>
    %cst_88 = arith.constant dense<0.000000e+00> : vector<5x5xf32>
    %268 = tpu.matmul %265, %266, %cst_88 {dimension_numbers = #tpu.dot_dimension_numbers<[1], [1], [0], [0], [0, 0, 1, 0], [], []>} : vector<5x8xf32>, vector<5x8xf32>, vector<5x5xf32> -> vector<5x5xf32>
    %cst_89 = arith.constant dense<0xFF800000> : vector<5xf32>
    %269 = vector.multi_reduction <maximumf>, %268, %cst_89 [1] : vector<5x5xf32> to vector<5xf32>
    %270 = vector.shape_cast %269 : vector<5xf32> to vector<5x1xf32>
    %271 = vector.broadcast %270 : vector<5x1xf32> to vector<5x5xf32>
    %272 = arith.subf %268, %271 : vector<5x5xf32>
    %273 = math.exp %272 : vector<5x5xf32>
    %cst_90 = arith.constant dense<0.000000e+00> : vector<5xf32>
    %274 = vector.multi_reduction <add>, %273, %cst_90 [1] : vector<5x5xf32> to vector<5xf32>
    %275 = vector.shape_cast %274 : vector<5xf32> to vector<5x1xf32>
    %276 = tpu.reciprocal %275 {approx = true} : vector<5x1xf32> -> vector<5x1xf32>
    %277 = vector.broadcast %276 : vector<5x1xf32> to vector<5x5xf32>
    %278 = arith.mulf %273, %277 : vector<5x5xf32>
    %cst_91 = arith.constant dense<0.000000e+00> : vector<5x8xf32>
    %279 = tpu.matmul %278, %267, %cst_91 {dimension_numbers = #tpu.dot_dimension_numbers<[1], [0], [0], [1], [0, 0, 1, 1], [], []>} : vector<5x5xf32>, vector<5x8xf32>, vector<5x8xf32> -> vector<5x8xf32>
    %280 = tpu.concatenate %228, %245, %262, %279 in 1 : vector<5x8xf32>, vector<5x8xf32>, vector<5x8xf32>, vector<5x8xf32> -> vector<5x32xf32>
    %c1_92 = arith.constant 1 : index
    %c0_93 = arith.constant 0 : index
    %c0_94 = arith.constant 0 : index
    %281 = vector.load %arg7[%c1_92, %c0_93, %c0_94] : memref<2x32x32xf32, #tpu.memory_space<vmem>>, vector<1x32x32xf32>
    %282 = vector.shape_cast %281 : vector<1x32x32xf32> to vector<32x32xf32>
    %cst_95 = arith.constant dense<0.000000e+00> : vector<5x32xf32>
    %283 = tpu.matmul %280, %282, %cst_95 {dimension_numbers = #tpu.dot_dimension_numbers<[1], [0], [0], [1], [0, 0, 1, 1], [], []>} : vector<5x32xf32>, vector<32x32xf32>, vector<5x32xf32> -> vector<5x32xf32>
    %284 = vector.broadcast %180 : vector<1x32xf32> to vector<5x32xf32>
    %285 = arith.addf %283, %284 : vector<5x32xf32>
    %286 = vector.broadcast %181 : vector<1x32xf32> to vector<5x32xf32>
    %287 = arith.mulf %286, %285 : vector<5x32xf32>
    %288 = arith.addf %174, %287 : vector<5x32xf32>
    %cst_96 = arith.constant dense<0.000000e+00> : vector<5xf32>
    %289 = vector.multi_reduction <add>, %288, %cst_96 [1] : vector<5x32xf32> to vector<5xf32>
    %290 = vector.shape_cast %289 : vector<5xf32> to vector<5x1xf32>
    %cst_97 = arith.constant 3.200000e+01 : f32
    %291 = vector.broadcast %cst_97 : f32 to vector<5x1xf32>
    %292 = arith.divf %290, %291 : vector<5x1xf32>
    %293 = vector.broadcast %292 : vector<5x1xf32> to vector<5x32xf32>
    %294 = arith.subf %288, %293 : vector<5x32xf32>
    %295 = arith.mulf %294, %294 : vector<5x32xf32>
    %cst_98 = arith.constant dense<0.000000e+00> : vector<5xf32>
    %296 = vector.multi_reduction <add>, %295, %cst_98 [1] : vector<5x32xf32> to vector<5xf32>
    %297 = vector.shape_cast %296 : vector<5xf32> to vector<5x1xf32>
    %cst_99 = arith.constant 3.200000e+01 : f32
    %298 = vector.broadcast %cst_99 : f32 to vector<5x1xf32>
    %299 = arith.divf %297, %298 : vector<5x1xf32>
    %cst_100 = arith.constant 9.99999997E-7 : f32
    %300 = vector.broadcast %cst_100 : f32 to vector<5x1xf32>
    %301 = arith.addf %299, %300 : vector<5x1xf32>
    %302 = math.rsqrt %301 : vector<5x1xf32>
    %303 = vector.broadcast %302 : vector<5x1xf32> to vector<5x32xf32>
    %304 = arith.mulf %294, %303 : vector<5x32xf32>
    %305 = vector.broadcast %182 : vector<1x32xf32> to vector<5x32xf32>
    %306 = arith.mulf %304, %305 : vector<5x32xf32>
    %307 = vector.broadcast %183 : vector<1x32xf32> to vector<5x32xf32>
    %308 = arith.addf %306, %307 : vector<5x32xf32>
    %c1_101 = arith.constant 1 : index
    %c0_102 = arith.constant 0 : index
    %c0_103 = arith.constant 0 : index
    %309 = vector.load %arg8[%c1_101, %c0_102, %c0_103] : memref<2x32x128xf32, #tpu.memory_space<vmem>>, vector<1x32x128xf32>
    %310 = vector.shape_cast %309 : vector<1x32x128xf32> to vector<32x128xf32>
    %cst_104 = arith.constant dense<0.000000e+00> : vector<5x128xf32>
    %311 = tpu.matmul %308, %310, %cst_104 {dimension_numbers = #tpu.dot_dimension_numbers<[1], [0], [0], [1], [0, 0, 1, 1], [], []>} : vector<5x32xf32>, vector<32x128xf32>, vector<5x128xf32> -> vector<5x128xf32>
    %312 = vector.broadcast %184 : vector<1x128xf32> to vector<5x128xf32>
    %313 = arith.addf %311, %312 : vector<5x128xf32>
    %cst_105 = arith.constant 5.000000e-01 : f32
    %314 = vector.broadcast %cst_105 : f32 to vector<5x128xf32>
    %315 = arith.mulf %314, %313 : vector<5x128xf32>
    %cst_106 = arith.constant 4.471500e-02 : f32
    %316 = vector.broadcast %cst_106 : f32 to vector<5x128xf32>
    %317 = arith.mulf %316, %313 : vector<5x128xf32>
    %318 = arith.mulf %317, %313 : vector<5x128xf32>
    %319 = arith.mulf %318, %313 : vector<5x128xf32>
    %320 = arith.addf %313, %319 : vector<5x128xf32>
    %cst_107 = arith.constant 0.797884583 : f32
    %321 = vector.broadcast %cst_107 : f32 to vector<5x128xf32>
    %322 = arith.mulf %321, %320 : vector<5x128xf32>
    %323 = math.tanh %322 : vector<5x128xf32>
    %cst_108 = arith.constant 1.000000e+00 : f32
    %324 = vector.broadcast %cst_108 : f32 to vector<5x128xf32>
    %325 = arith.addf %324, %323 : vector<5x128xf32>
    %326 = arith.mulf %315, %325 : vector<5x128xf32>
    %c1_109 = arith.constant 1 : index
    %c0_110 = arith.constant 0 : index
    %c0_111 = arith.constant 0 : index
    %327 = vector.load %arg9[%c1_109, %c0_110, %c0_111] : memref<2x128x32xf32, #tpu.memory_space<vmem>>, vector<1x128x32xf32>
    %328 = vector.shape_cast %327 : vector<1x128x32xf32> to vector<128x32xf32>
    %cst_112 = arith.constant dense<0.000000e+00> : vector<5x32xf32>
    %329 = tpu.matmul %326, %328, %cst_112 {dimension_numbers = #tpu.dot_dimension_numbers<[1], [0], [0], [1], [0, 0, 1, 1], [], []>} : vector<5x128xf32>, vector<128x32xf32>, vector<5x32xf32> -> vector<5x32xf32>
    %330 = vector.broadcast %185 : vector<1x32xf32> to vector<5x32xf32>
    %331 = arith.addf %329, %330 : vector<5x32xf32>
    %332 = vector.broadcast %186 : vector<1x32xf32> to vector<5x32xf32>
    %333 = arith.mulf %332, %331 : vector<5x32xf32>
    %334 = arith.addf %288, %333 : vector<5x32xf32>
    %335 = vector.extract_strided_slice %334 {offsets = [0, 0], sizes = [1, 32], strides = [1, 1]} : vector<5x32xf32> to vector<1x32xf32>
    %cst_113 = arith.constant dense<0.000000e+00> : vector<1xf32>
    %336 = vector.multi_reduction <add>, %335, %cst_113 [1] : vector<1x32xf32> to vector<1xf32>
    %337 = vector.shape_cast %336 : vector<1xf32> to vector<1x1xf32>
    %cst_114 = arith.constant 3.200000e+01 : f32
    %338 = vector.broadcast %cst_114 : f32 to vector<1x1xf32>
    %339 = arith.divf %337, %338 : vector<1x1xf32>
    %340 = vector.broadcast %339 : vector<1x1xf32> to vector<1x32xf32>
    %341 = arith.subf %335, %340 : vector<1x32xf32>
    %342 = arith.mulf %341, %341 : vector<1x32xf32>
    %cst_115 = arith.constant dense<0.000000e+00> : vector<1xf32>
    %343 = vector.multi_reduction <add>, %342, %cst_115 [1] : vector<1x32xf32> to vector<1xf32>
    %344 = vector.shape_cast %343 : vector<1xf32> to vector<1x1xf32>
    %cst_116 = arith.constant 3.200000e+01 : f32
    %345 = vector.broadcast %cst_116 : f32 to vector<1x1xf32>
    %346 = arith.divf %344, %345 : vector<1x1xf32>
    %cst_117 = arith.constant 9.99999997E-7 : f32
    %347 = vector.broadcast %cst_117 : f32 to vector<1x1xf32>
    %348 = arith.addf %346, %347 : vector<1x1xf32>
    %349 = math.rsqrt %348 : vector<1x1xf32>
    %350 = vector.broadcast %349 : vector<1x1xf32> to vector<1x32xf32>
    %351 = arith.mulf %341, %350 : vector<1x32xf32>
    %352 = arith.mulf %351, %3 : vector<1x32xf32>
    %353 = arith.addf %352, %4 : vector<1x32xf32>
    %c0_118 = arith.constant 0 : index
    %c0_119 = arith.constant 0 : index
    %354 = vector.load %arg4[%c0_118, %c0_119] : memref<32x128xf32, #tpu.memory_space<vmem>>, vector<32x128xf32>
    %cst_120 = arith.constant dense<0.000000e+00> : vector<1x128xf32>
    %355 = tpu.matmul %353, %354, %cst_120 {dimension_numbers = #tpu.dot_dimension_numbers<[1], [0], [0], [1], [0, 0, 1, 1], [], []>} : vector<1x32xf32>, vector<32x128xf32>, vector<1x128xf32> -> vector<1x128xf32>
    %356 = arith.addf %355, %5 : vector<1x128xf32>
    %c0_121 = arith.constant 0 : index
    %c0_122 = arith.constant 0 : index
    %c0_123 = arith.constant 0 : index
    %357 = vector.load %arg11[%c0_121, %c0_122, %c0_123] : memref<1x1x128xf32, #tpu.memory_space<vmem>>, vector<1x1x128xf32>
    %358 = vector.shape_cast %357 : vector<1x1x128xf32> to vector<1x128xf32>
    %359 = vector.shape_cast %356 : vector<1x128xf32> to vector<1x1x128xf32>
    tpu.vector_store %arg11[%c0_121, %c0_122, %c0_123], %359 {strides = array<i32>} : memref<1x1x128xf32, #tpu.memory_space<vmem>>, vector<1x1x128xf32>,
    return
  }
  func.func @transform_0(%arg0: i32) -> (i32, i32, i32) {
    %c0_i32 = arith.constant 0 : i32
    %c0_i32_0 = arith.constant 0 : i32
    %c0_i32_1 = arith.constant 0 : i32
    return %arg0, %c0_i32, %c0_i32_0 : i32, i32, i32
  }
  func.func @transform_1(%arg0: i32) -> (i32, i32) {
    %c0_i32 = arith.constant 0 : i32
    %c0_i32_0 = arith.constant 0 : i32
    %c0_i32_1 = arith.constant 0 : i32
    return %c0_i32, %c0_i32_0 : i32, i32
  }
  func.func @transform_2(%arg0: i32) -> (i32, i32) {
    %c0_i32 = arith.constant 0 : i32
    %c0_i32_0 = arith.constant 0 : i32
    %c0_i32_1 = arith.constant 0 : i32
    return %c0_i32, %c0_i32_0 : i32, i32
  }
  func.func @transform_3(%arg0: i32) -> (i32, i32) {
    %c0_i32 = arith.constant 0 : i32
    %c0_i32_0 = arith.constant 0 : i32
    %c0_i32_1 = arith.constant 0 : i32
    return %c0_i32, %c0_i32_0 : i32, i32
  }
  func.func @transform_4(%arg0: i32) -> (i32, i32) {
    %c0_i32 = arith.constant 0 : i32
    %c0_i32_0 = arith.constant 0 : i32
    %c0_i32_1 = arith.constant 0 : i32
    return %c0_i32, %c0_i32_0 : i32, i32
  }
  func.func @transform_5(%arg0: i32) -> (i32, i32, i32) {
    %c0_i32 = arith.constant 0 : i32
    %c0_i32_0 = arith.constant 0 : i32
    %c0_i32_1 = arith.constant 0 : i32
    %c0_i32_2 = arith.constant 0 : i32
    return %c0_i32, %c0_i32_0, %c0_i32_1 : i32, i32, i32
  }
  func.func @transform_6(%arg0: i32) -> (i32, i32, i32) {
    %c0_i32 = arith.constant 0 : i32
    %c0_i32_0 = arith.constant 0 : i32
    %c0_i32_1 = arith.constant 0 : i32
    %c0_i32_2 = arith.constant 0 : i32
    return %c0_i32, %c0_i32_0, %c0_i32_1 : i32, i32, i32
  }
  func.func @transform_7(%arg0: i32) -> (i32, i32, i32) {
    %c0_i32 = arith.constant 0 : i32
    %c0_i32_0 = arith.constant 0 : i32
    %c0_i32_1 = arith.constant 0 : i32
    %c0_i32_2 = arith.constant 0 : i32
    return %c0_i32, %c0_i32_0, %c0_i32_1 : i32, i32, i32
  }
  func.func @transform_8(%arg0: i32) -> (i32, i32, i32) {
    %c0_i32 = arith.constant 0 : i32
    %c0_i32_0 = arith.constant 0 : i32
    %c0_i32_1 = arith.constant 0 : i32
    %c0_i32_2 = arith.constant 0 : i32
    return %c0_i32, %c0_i32_0, %c0_i32_1 : i32, i32, i32
  }
  func.func @transform_9(%arg0: i32) -> (i32, i32, i32) {
    %c0_i32 = arith.constant 0 : i32
    %c0_i32_0 = arith.constant 0 : i32
    %c0_i32_1 = arith.constant 0 : i32
    %c0_i32_2 = arith.constant 0 : i32
    return %c0_i32, %c0_i32_0, %c0_i32_1 : i32, i32, i32
  }
  func.func @transform_10(%arg0: i32) -> (i32, i32, i32) {
    %c0_i32 = arith.constant 0 : i32
    %c0_i32_0 = arith.constant 0 : i32
    %c0_i32_1 = arith.constant 0 : i32
    return %arg0, %c0_i32, %c0_i32_0 : i32, i32, i32
  }
}

</mosaic_0001>

<bundles_post_ra>
// kernel: uni_forward.1
= control target key start
LH: loop header
LB: loop body
LE: loop exit
PB: predicated region body
PF: predicated region fallthrough
CT: control target
= control target key end

     0   :  { %15 = vsyncpa [#allocation3], 0  ;;  %s4889_s0 = inlined_call_operand.vmem [shape: f32[2,4,768], index: 0, kind: input, shape index: {}]   ;;  %s4890_s1 = inlined_call_operand.vmem [shape: f32[768,32], index: 1, kind: input, shape index: {}]   ;;  %s4891_s2 = inlined_call_operand.vmem [shape: f32[5,32], index: 2, kind: input, shape index: {}]   ;;  %s4892_s3 = inlined_call_operand.vmem [shape: f32[32,128], index: 3, kind: input, shape index: {}]   ;;  %s4893_s4 = inlined_call_operand.vmem [shape: f32[8,128], index: 4, kind: input, shape index: {}]   ;;  %s4894_s5 = inlined_call_operand.vmem [shape: f32[2,32,96], index: 5, kind: input, shape index: {}]   ;;  %s4895_s6 = inlined_call_operand.vmem [shape: f32[2,32,32], index: 6, kind: input, shape index: {}]   ;;  %s4896_s7 = inlined_call_operand.vmem [shape: f32[2,32,128], index: 7, kind: input, shape index: {}]   ;;  %s4897_s8 = inlined_call_operand.vmem [shape: f32[2,128,32], index: 8, kind: input, shape index: {}]   ;;  %s4898_s9 = inlined_call_operand.vmem [shape: f32[2,16,128], index: 9, kind: input, shape index: {}]   ;;  %s4899_s10 = inlined_call_operand.hbm [shape: f32[2,1,128], index: 10, kind: output, shape index: {}]  }
   0x1   :  { %17 = vsyncpa [#allocation3 + $0x1], 0  ;;  %s3976_s13 = smov 0   ;;  %s3978_s14 = smov 0  }
   0x2   :  { %s3980_s15 = smov 0   ;;  %s3982_s16 = smov 0  }
   0x3 LB: > { %s3997_s17 = sadd.s32 4294967295, %s3901_s16   ;;  %s3036_s18 = sadd.s32 4294967294, %s3901_s16   ;;  %s3901_s16 = sphi %s3982_s16, %s4929_s16   ;;  %s3897_s15 = sphi %s3980_s15, %s4928_s15   ;;  %s3893_s14 = sphi %s3978_s14, %s4927_s14   ;;  %s3889_s13 = sphi %s3976_s13, %s4926_s13  }
   0x4   : > { %s4001_s19 = sadd.s32 1, %s3901_s16   ;;  %s245_s20 = sadd.s32 1, %s3897_s15 }
   0x5   : > { %s242_s21 = ssub.s32 %s3901_s16, %s4001_s19  ;;  %p255_p0 = scmp.ne.s32.totalorder %s3897_s15, %s3893_s14 }
   0x6   : > { %p243_p1 = scmp.eq.s32.totalorder %s242_s21, 0  ;;  %p256_p2 = scmp.eq.s32.totalorder %s3997_s17, 1 }
   0x7   : > { %p261_p3 = scmp.ne.s32.totalorder %s3893_s14, %s3889_s13  ;;  %p262_p4 = scmp.eq.s32.totalorder %s3036_s18, 1 }
   0x8   : > { %s4012_s22 = scalar_select %p243_p1, %s3897_s15, %s245_s20  }
   0x9   : > { %p4014_p5 = por %p256_p2, %p255_p0  ;;  %p4018_p6 = por %p262_p4, %p261_p3 }
   0xa   : > { %4911 = sst [smem:[#allocation5_spill]] %s4012_s22  ;;  %p3039_p7 = scmp.ge.s32.totalorder %s3901_s16, 1 }
   0xb   : > { %p315_p8 = scmp.lt.s32.totalorder %s3901_s16, 3 }
   0xd   : > { %p316_p9 = pnand %p3039_p7, %p315_p8 }
   0xe   : > { %v377_v0 = vld [vmem:[%s4890_s1 + $0x80] sm:$0xff] (!%p316_p9)  ;;  %v378_v1 = vld [vmem:[%s4890_s1 + $0x88] sm:$0xff] (!%p316_p9)  ;;  %v379_v11 = vld [vmem:[%s4890_s1 + $0x90] sm:$0xff] (!%p316_p9)  ;;  %p352_p10 = scmp.lt.s32.totalorder (!%p316_p9), %s3997_s17, 1  ;;  %vm686_vm0 = vcmask (!%p316_p9), 1040384   ;;  %vm692_vm1 = vcmask (!%p316_p9), 258048  }
   0xf   : > { %319 = sbr.rel (%p316_p9) target bundleno = 8472 (0x2118), region = 60  ;;  %v361_v2 = vld [vmem:[%s4890_s1] sm:$0xff] (!%p316_p9)  ;;  %v3546_v3 = vpack.c.bf16 (!%p316_p9), %v378_v1, %v377_v0  ;;  %v362_v4 = vld [vmem:[%s4890_s1 + $0x8] sm:$0xff] (!%p316_p9)  ;;  %v380_v13 = vld [vmem:[%s4890_s1 + $0x98] sm:$0xff] (!%p316_p9)  ;;  %vm3904_vm2 = vmmov (!%p316_p9), 0   ;;  %vm725_vm3 = vcmask (!%p316_p9), 261120  }
  0x10   : > { %v409_v5 = vld [vmem:[%s4890_s1 + $0x180] sm:$0xff] (!%p316_p9)  ;;  %v410_v6 = vld [vmem:[%s4890_s1 + $0x188] sm:$0xff] (!%p316_p9)  ;;  %v3548_v7 = vpack.c.bf16 (!%p316_p9), %v362_v4, %v361_v2  ;;  %v363_v14 = vld [vmem:[%s4890_s1 + $0x10] sm:$0xff] (!%p316_p9)  ;;  %v3550_v16 = vpack.c.bf16 (!%p316_p9), %v380_v13, %v379_v11  ;;  %s3907_s20 = smov (!%p316_p9), 96   ;;  %vm803_vm4 = vcmask (!%p316_p9), 64512   ;;  %vm897_vm5 = vcmask (!%p316_p9), 1044480  }
  0x11   : > { %v3578_v8 = vpack.c.bf16 (!%p316_p9), %v410_v6, %v409_v5  ;;  %v393_v9 = vld [vmem:[%s4890_s1 + $0x100] sm:$0xff] (!%p316_p9)  ;;  %v394_v10 = vld [vmem:[%s4890_s1 + $0x108] sm:$0xff] (!%p316_p9)  ;;  %3547 = vmatprep.subr.bf16.mxu0 (!%p316_p9), %v3546_v3  ;;  %v364_v15 = vld [vmem:[%s4890_s1 + $0x18] sm:$0xff] (!%p316_p9)  ;;  %vm879_vm6 = vcmask (!%p316_p9), 36864   ;;  %s4910_s21 = smov (!%p316_p9), 120   ;;  %vm893_vm7 = vcmask (!%p316_p9), 39936  }
  0x12   : > { %v3580_v12 = vpack.c.bf16 (!%p316_p9), %v394_v10, %v393_v9  ;;  %3549 = vmatpush3.bf16.msra.mxu0 (!%p316_p9), %v3548_v7  ;;  %v3552_v17 = vpack.c.bf16 (!%p316_p9), %v364_v15, %v363_v14  ;;  %v411_v18 = vld [vmem:[%s4890_s1 + $0x190] sm:$0xff] (!%p316_p9)  ;;  %v412_v19 = vld [vmem:[%s4890_s1 + $0x198] sm:$0xff] (!%p316_p9)  ;;  %v381_v23 = vld [vmem:[%s4890_s1 + $0xa0] sm:$0xff] (!%p316_p9)  ;;  %s4908_s26 = smov (!%p316_p9), 56   ;;  %s4906_s22 = smov (!%p316_p9), 112   ;;  %vm1481_vm8 = vcmask (!%p316_p9), 130048  }
  0x13   : > { %3579 = vmatprep.subr.bf16.mxu1 (!%p316_p9), %v3578_v8  ;;  %v395_v20 = vld [vmem:[%s4890_s1 + $0x110] sm:$0xff] (!%p316_p9)  ;;  %v3582_v21 = vpack.c.bf16 (!%p316_p9), %v412_v19, %v411_v18  ;;  %v396_v22 = vld [vmem:[%s4890_s1 + $0x118] sm:$0xff] (!%p316_p9)  ;;  %v382_v24 = vld [vmem:[%s4890_s1 + $0xa8] sm:$0xff] (!%p316_p9)  ;;  %3551 = vmatprep.subr.bf16.mxu0 (!%p316_p9), %v3550_v16  ;;  %s4900_s27 = smov (!%p316_p9), 48   ;;  %s4905_s29 = smov (!%p316_p9), 72   ;;  %vm1483_vm9 = vcmask (!%p316_p9), 195584  }
  0x14   : > { %3581 = vmatpush3.bf16.msra.mxu1 (!%p316_p9), %v3580_v12  ;;  %v3584_v25 = vpack.c.bf16 (!%p316_p9), %v396_v22, %v395_v20  ;;  %v3554_v26 = vpack.c.bf16 (!%p316_p9), %v382_v24, %v381_v23  ;;  %v365_v27 = vld [vmem:[%s4890_s1 + $0x20] sm:$0xff] (!%p316_p9)  ;;  %v366_v28 = vld [vmem:[%s4890_s1 + $0x28] sm:$0xff] (!%p316_p9)  ;;  %v383_v35 = vld [vmem:[%s4890_s1 + $0xb0] sm:$0xff] (!%p316_p9)  ;;  %s4904_s11 = smov (!%p316_p9), 104   ;;  %s4903_s12 = smov (!%p316_p9), 40   ;;  %vm2868_vm10 = vcmask (!%p316_p9), 253952  }
  0x15   : > { %v413_v29 = vld [vmem:[%s4890_s1 + $0x1a0] sm:$0xff] (!%p316_p9)  ;;  %3583 = vmatprep.subr.bf16.mxu1 (!%p316_p9), %v3582_v21  ;;  %v414_v30 = vld [vmem:[%s4890_s1 + $0x1a8] sm:$0xff] (!%p316_p9)  ;;  %v3556_v33 = vpack.c.bf16 (!%p316_p9), %v366_v28, %v365_v27  ;;  %v384_v36 = vld [vmem:[%s4890_s1 + $0xb8] sm:$0xff] (!%p316_p9)  ;;  %s4902_s18 = smov (!%p316_p9), 8  }
  0x16   : > { %v397_v31 = vld [vmem:[%s4890_s1 + $0x120] sm:$0xff]  ;;  %v398_v32 = vld [vmem:[%s4890_s1 + $0x128] sm:$0xff]  ;;  %3553 = vmatpush3.bf16.msra.mxu0 %v3552_v17  ;;  %v3586_v34 = vpack.c.bf16 %v414_v30, %v413_v29  ;;  %v367_v37 = vld [vmem:[%s4890_s1 + $0x30] sm:$0xff]  ;;  %v3558_v39 = vpack.c.bf16 %v384_v36, %v383_v35  ;;  %s4118_s30 = scalar_select %p352_p10, %s3997_s17, 1 }
  0x17   : > { %3555 = vmatprep.subr.bf16.mxu0 %v3554_v26  ;;  %v3588_v38 = vpack.c.bf16 %v398_v32, %v397_v31  ;;  %v368_v40 = vld [vmem:[%s4890_s1 + $0x38] sm:$0xff]  ;;  %v415_v41 = vld [vmem:[%s4890_s1 + $0x1b0] sm:$0xff]  ;;  %v385_v46 = vld [vmem:[%s4890_s1 + $0xc0] sm:$0xff] }
  0x18   : > { %3585 = vmatpush3.bf16.msra.mxu1 %v3584_v25  ;;  %v416_v42 = vld [vmem:[%s4890_s1 + $0x1b8] sm:$0xff]  ;;  %v399_v44 = vld [vmem:[%s4890_s1 + $0x130] sm:$0xff]  ;;  %v386_v47 = vld [vmem:[%s4890_s1 + $0xc8] sm:$0xff]  ;;  %v3560_v48 = vpack.c.bf16 %v368_v40, %v367_v37  ;;  %s3732_s28 = smul.u32 24, %s4118_s30  ;;  %s4907_s30 = smov 80  }
  0x19   : > { %3587 = vmatprep.subr.bf16.mxu1 %v3586_v34  ;;  %v3590_v43 = vpack.c.bf16 %v416_v42, %v415_v41  ;;  %v400_v45 = vld [vmem:[%s4890_s1 + $0x138] sm:$0xff]  ;;  %v417_v49 = vld [vmem:[%s4890_s1 + $0x1c0] sm:$0xff]  ;;  %v418_v50 = vld [vmem:[%s4890_s1 + $0x1c8] sm:$0xff]  ;;  %v3562_v52 = vpack.c.bf16 %v386_v47, %v385_v46 }
  0x1a   : > { %3557 = vmatpush3.bf16.msra.mxu0 %v3556_v33  ;;  %v3592_v51 = vpack.c.bf16 %v400_v45, %v399_v44  ;;  %v369_v53 = vld [vmem:[%s4890_s1 + $0x40] sm:$0xff]  ;;  %v370_v54 = vld [vmem:[%s4890_s1 + $0x48] sm:$0xff]  ;;  %v3594_v56 = vpack.c.bf16 %v418_v50, %v417_v49  ;;  %v387_v58 = vld [vmem:[%s4890_s1 + $0xd0] sm:$0xff]  ;;  %s4175_s25 = scalar_lea.vmem %s4889_s0, %s3732_s28  ;;  %s3906_s28 = smov 64  }
  0x1b   : > { %3559 = vmatprep.subr.bf16.mxu0 %v3558_v39  ;;  %v401_v55 = vld [vmem:[%s4890_s1 + $0x140] sm:$0xff]  ;;  %v402_v57 = vld [vmem:[%s4890_s1 + $0x148] sm:$0xff]  ;;  %v388_v59 = vld [vmem:[%s4890_s1 + $0xd8] sm:$0xff]  ;;  %v3564_v62 = vpack.c.bf16 %v370_v54, %v369_v53 }
  0x1c   : > { %3589 = vmatpush3.bf16.msra.mxu1 %v3588_v38  ;;  %v419_v60 = vld [vmem:[%s4890_s1 + $0x1d0] sm:$0xff]  ;;  %v420_v61 = vld [vmem:[%s4890_s1 + $0x1d8] sm:$0xff]  ;;  %v3596_v63 = vpack.c.bf16 %v402_v57, %v401_v55  ;;  %v3566_v0 = vpack.c.bf16 %v388_v59, %v387_v58  ;;  %v389_v6 = vld [vmem:[%s4890_s1 + $0xe0] sm:$0xff] }
  0x1d   : > { %3591 = vmatprep.subr.bf16.mxu1 %v3590_v43  ;;  %v371_v1 = vld [vmem:[%s4890_s1 + $0x50] sm:$0xff]  ;;  %v372_v2 = vld [vmem:[%s4890_s1 + $0x58] sm:$0xff]  ;;  %v3598_v4 = vpack.c.bf16 %v420_v61, %v419_v60  ;;  %v390_v7 = vld [vmem:[%s4890_s1 + $0xe8] sm:$0xff] }
  0x1e   : > { %3561 = vmatpush3.bf16.msra.mxu0 %v3560_v48  ;;  %v403_v3 = vld [vmem:[%s4890_s1 + $0x150] sm:$0xff]  ;;  %v404_v5 = vld [vmem:[%s4890_s1 + $0x158] sm:$0xff]  ;;  %v421_v8 = vld [vmem:[%s4890_s1 + $0x1e0] sm:$0xff]  ;;  %v3568_v10 = vpack.c.bf16 %v372_v2, %v371_v1  ;;  %v3570_v14 = vpack.c.bf16 %v390_v7, %v389_v6 }
  0x1f   : > { %3563 = vmatprep.subr.bf16.mxu0 %v3562_v52  ;;  %v422_v9 = vld [vmem:[%s4890_s1 + $0x1e8] sm:$0xff]  ;;  %v373_v11 = vld [vmem:[%s4890_s1 + $0x60] sm:$0xff]  ;;  %v3600_v13 = vpack.c.bf16 %v404_v5, %v403_v3  ;;  %v391_v20 = vld [vmem:[%s4890_s1 + $0xf0] sm:$0xff] }
  0x20   : > { %3593 = vmatpush3.bf16.msra.mxu1 %v3592_v51  ;;  %v358_v12 = vld [vmem:[%s4175_s25] sm:$0xff]  ;;  %v374_v15 = vld [vmem:[%s4890_s1 + $0x68] sm:$0xff]  ;;  %v3602_v19 = vpack.c.bf16 %v422_v9, %v421_v8  ;;  %v392_v21 = vld [vmem:[%s4890_s1 + $0xf8] sm:$0xff] }
  0x21   : > { %3595 = vmatprep.subr.bf16.mxu1 %v3594_v56  ;;  %v405_v16 = vld [vmem:[%s4890_s1 + $0x160] sm:$0xff]  ;;  %v406_v17 = vld [vmem:[%s4890_s1 + $0x168] sm:$0xff]  ;;  %v464_v18 = vcombine.high %v358_v12, %v358_v12  ;;  %v423_v23 = vld [vmem:[%s4890_s1 + $0x1f0] sm:$0xff]  ;;  %v3572_v26 = vpack.c.bf16 %v374_v15, %v373_v11  ;;  %v3574_v28 = vpack.c.bf16 %v392_v21, %v391_v20 }
  0x22   : > { %3565 = vmatpush3.bf16.msra.mxu0 %v3564_v62  ;;  %v359_v22 = vld [vmem:[%s4175_s25 + $0x8] sm:$0xff]  ;;  %v424_v24 = vld [vmem:[%s4890_s1 + $0x1f8] sm:$0xff]  ;;  %v3604_v27 = vpack.c.bf16 %v406_v17, %v405_v16  ;;  %v375_v29 = vld [vmem:[%s4890_s1 + $0x70] sm:$0xff] }
  0x23   : > { %3567 = vmatprep.subr.bf16.mxu0 %v3566_v0  ;;  %534 = vmatprep.mubr.f32.mxu0 %v464_v18  ;;  %v465_v25 = vcombine.high %v359_v22, %v359_v22  ;;  %v376_v30 = vld [vmem:[%s4890_s1 + $0x78] sm:$0xff]  ;;  %v407_v31 = vld [vmem:[%s4890_s1 + $0x170] sm:$0xff]  ;;  %v3606_v32 = vpack.c.bf16 %v424_v24, %v423_v23  ;;  %v441_v34 = vld [vmem:[%s4890_s1 + $0x280] sm:$0xff] }
  0x24   : > { %3597 = vmatpush3.bf16.msra.mxu1 %v3596_v63  ;;  %v408_v33 = vld [vmem:[%s4890_s1 + $0x178] sm:$0xff]  ;;  %v442_v35 = vld [vmem:[%s4890_s1 + $0x288] sm:$0xff]  ;;  %v3576_v36 = vpack.c.bf16 %v376_v30, %v375_v29  ;;  %v425_v39 = vld [vmem:[%s4890_s1 + $0x200] sm:$0xff] }
  0x25   : > { %3599 = vmatprep.subr.bf16.mxu1 %v3598_v4  ;;  %604 = vmatprep.mubr.f32.mxu1 %v465_v25  ;;  %v3608_v37 = vpack.c.bf16 %v408_v33, %v407_v31  ;;  %v3610_v38 = vpack.c.bf16 %v442_v35, %v441_v34  ;;  %v426_v40 = vld [vmem:[%s4890_s1 + $0x208] sm:$0xff]  ;;  %v443_v41 = vld [vmem:[%s4890_s1 + $0x290] sm:$0xff]  ;;  %v444_v42 = vld [vmem:[%s4890_s1 + $0x298] sm:$0xff] }
  0x26   : > { %3569 = vmatpush3.bf16.msra.mxu0 %v3568_v10  ;;  %v3612_v43 = vpack.c.bf16 %v426_v40, %v425_v39  ;;  %v360_v44 = vld [vmem:[%s4175_s25 + $0x10] sm:$0xff]  ;;  %v3614_v45 = vpack.c.bf16 %v444_v42, %v443_v41  ;;  %v428_v47 = vld [vmem:[%s4890_s1 + $0x218] sm:$0xff]  ;;  %v445_v49 = vld [vmem:[%s4890_s1 + $0x2a0] sm:$0xff]  ;;  %s3908_s25 = smov 88  }
  0x27   : > { %3571 = vmatprep.subr.bf16.mxu0 %v3570_v14  ;;  %v427_v46 = vld [vmem:[%s4890_s1 + $0x210] sm:$0xff]  ;;  %v466_v48 = vcombine.high %v360_v44, %v360_v44  ;;  %v446_v50 = vld [vmem:[%s4890_s1 + $0x2a8] sm:$0xff]  ;;  %v429_v53 = vld [vmem:[%s4890_s1 + $0x220] sm:$0xff] }
  0x28   : > { %3601 = vmatpush3.bf16.msra.mxu1 %v3600_v13  ;;  %v3616_v51 = vpack.c.bf16 %v428_v47, %v427_v46  ;;  %v3618_v52 = vpack.c.bf16 %v446_v50, %v445_v49  ;;  %v430_v54 = vld [vmem:[%s4890_s1 + $0x228] sm:$0xff]  ;;  %v447_v55 = vld [vmem:[%s4890_s1 + $0x2b0] sm:$0xff]  ;;  %v448_v56 = vld [vmem:[%s4890_s1 + $0x2b8] sm:$0xff] }
  0x29   : > { %3603 = vmatprep.subr.bf16.mxu1 %v3602_v19  ;;  %v3620_v57 = vpack.c.bf16 %v430_v54, %v429_v53  ;;  %v3622_v58 = vpack.c.bf16 %v448_v56, %v447_v55  ;;  %v431_v59 = vld [vmem:[%s4890_s1 + $0x230] sm:$0xff]  ;;  %v432_v60 = vld [vmem:[%s4890_s1 + $0x238] sm:$0xff]  ;;  %v449_v61 = vld [vmem:[%s4890_s1 + $0x2c0] sm:$0xff]  ;;  %v3903_v53 = vmov 0.0|0.0  }
  0x2a   : > { %3573 = vmatpush3.bf16.msra.mxu0 %v3572_v26  ;;  %v450_v62 = vld [vmem:[%s4890_s1 + $0x2c8] sm:$0xff]  ;;  %v3624_v63 = vpack.c.bf16 %v432_v60, %v431_v59  ;;  %v433_v1 = vld [vmem:[%s4890_s1 + $0x240] sm:$0xff]  ;;  %v451_v3 = vld [vmem:[%s4890_s1 + $0x2d0] sm:$0xff] }
  0x2b   : > { %3575 = vmatprep.subr.bf16.mxu0 %v3574_v28  ;;  %v3626_v0 = vpack.c.bf16 %v450_v62, %v449_v61  ;;  %v434_v2 = vld [vmem:[%s4890_s1 + $0x248] sm:$0xff]  ;;  %v452_v4 = vld [vmem:[%s4890_s1 + $0x2d8] sm:$0xff]  ;;  %v435_v7 = vld [vmem:[%s4890_s1 + $0x250] sm:$0xff] }
  0x2c   : > { %3605 = vmatpush3.bf16.msra.mxu1 %v3604_v27  ;;  %v3628_v5 = vpack.c.bf16 %v434_v2, %v433_v1  ;;  %v3630_v6 = vpack.c.bf16 %v452_v4, %v451_v3  ;;  %v436_v8 = vld [vmem:[%s4890_s1 + $0x258] sm:$0xff]  ;;  %v453_v9 = vld [vmem:[%s4890_s1 + $0x2e0] sm:$0xff]  ;;  %v454_v10 = vld [vmem:[%s4890_s1 + $0x2e8] sm:$0xff] }
  0x2d   : > { %3607 = vmatprep.subr.bf16.mxu1 %v3606_v32  ;;  %v3632_v11 = vpack.c.bf16 %v436_v8, %v435_v7  ;;  %v437_v13 = vld [vmem:[%s4890_s1 + $0x260] sm:$0xff]  ;;  %v438_v14 = vld [vmem:[%s4890_s1 + $0x268] sm:$0xff]  ;;  %v455_v15 = vld [vmem:[%s4890_s1 + $0x2f0] sm:$0xff] }
  0x2e   : > { %3577 = vmatpush3.bf16.msra.mxu0 %v3576_v36  ;;  %v456_v16 = vld [vmem:[%s4890_s1 + $0x2f8] sm:$0xff]  ;;  %v3636_v17 = vpack.c.bf16 %v438_v14, %v437_v13  ;;  %v439_v19 = vld [vmem:[%s4890_s1 + $0x270] sm:$0xff]  ;;  %v357_v25 = vld [vmem:[%s4893_s4] sm:$0xff] }
  0x2f   : > { %3611 = vmatprep.subr.bf16.mxu0 %v3610_v38  ;;  %v3638_v18 = vpack.c.bf16 %v456_v16, %v455_v15  ;;  %v440_v20 = vld [vmem:[%s4890_s1 + $0x278] sm:$0xff]  ;;  %v681_v39 = vrot.slane %v357_v25, 1  ;;  %v688_v41 = vld [vmem:[%s4891_s2] sm:$0x1f]  ;;  %v719_v54 = vld [vmem:[%s4894_s5 + $0x10] sm:$0xff] }
  0x30   : > { %3609 = vmatpush3.bf16.msra.mxu1 %v3608_v37  ;;  %v3640_v21 = vpack.c.bf16 %v440_v20, %v439_v19  ;;  %v717_v50 = vld [vmem:[%s4894_s5] sm:$0xff]  ;;  %v720_v55 = vld [vmem:[%s4894_s5 + $0x18] sm:$0xff] }
  0x31   : > { %535 = vmatmul.mubr.f32.vlgmr.msra.gmra.mrb[0].mxu0 %v358_v12  ;;  %v3634_v12 = vpack.c.bf16 %v454_v10, %v453_v9  ;;  %3642 = vmatprep.subr.bf16.mxu1 %v3903_v53  ;;  %v3646_v56 = vpack.c.bf16 %v720_v55, %v719_v54  ;;  %v4368_v61 = vld [vmem:[%s4898_s9] sm:$0xff] }
  0x32   : > { %3613 = vmatpush3.bf16.msra.mxu0 %v3612_v43  ;;  %674 = vmatprep.mubr.f32.mxu0 %v466_v48 }
  0x33   : > { %605 = vmatmul.mubr.f32.vlgmr.msra.gmra.mrb[0].mxu1 %v359_v22  ;;  %3615 = vmatprep.subr.bf16.mxu0 %v3614_v45  ;;  %v457_v22 = vlaneseq }
  0x35   : > { %v4327_v23 = vshrl.u32 %v457_v22, 7 }
  0x36   : > { %3617 = vmatpush3.bf16.msra.mxu0 %v3616_v51  ;;  %v718_v51 = vld [vmem:[%s4894_s5 + $0x8] sm:$0xff] }
  0x37   : > { %3619 = vmatprep.subr.bf16.mxu0 %v3618_v52  ;;  %v4330_v24 = vsub.s32 0, %v4327_v23  ;;  %v3643_v52 = vpack.c.bf16 %v718_v51, %v717_v50  ;;  %v4371_v62 = vsub.s32 1, %v4327_v23 }
  0x39   : > { %v460_v27 = vrot.slane %v357_v25, %v4330_v24  ;;  %3644 = vmatpush3.bf16.msra.mxu1 %v3643_v52  ;;  %v715_v2 = vrot.slane %v4368_v61, %v4371_v62 }
  0x3a   : > { %3621 = vmatpush3.bf16.msra.mxu0 %v3620_v57  ;;  %3645 = vmatprep.subr.bf16.mxu1 %v3903_v53  ;;  %v3905_v57 = vmov 0.0  }
  0x3b   : > { %3623 = vmatprep.subr.bf16.mxu0 %v3622_v58  ;;  %3327 = vmatprep.mubr.msk.f32.mxu1 %vm3904_vm2, %v3905_v57 }
  0x3d   : > { %3647 = vmatpush3.bf16.msra.mxu1 %v3646_v56 }
  0x3e   : > { %3625 = vmatpush3.bf16.msra.mxu0 %v3624_v63  ;;  %3330 = vmatprep.subr.mxu1 %v3905_v57  ;;  %v710_v63 = vrot.slane %v4368_v61, %v4330_v24 }
  0x3f   : > { %3627 = vmatprep.subr.bf16.mxu0 %v3626_v0 }
  0x42   : > { %3629 = vmatpush3.bf16.msra.mxu0 %v3628_v5  ;;  %v723_v5 = vsub.s32 2, %v4327_v23 }
  0x43   : > { %3631 = vmatprep.subr.bf16.mxu0 %v3630_v6 }
  0x44   : > { %v724_v6 = vrot.slane %v4368_v61, %v723_v5 }
  0x46   : > { %3633 = vmatpush3.bf16.msra.mxu0 %v3632_v11 }
  0x47   : > { %3635 = vmatprep.subr.bf16.mxu0 %v3634_v12 }
  0x4a   : > { %3637 = vmatpush3.bf16.msra.mxu0 %v3636_v17 }
  0x4b   : > { %3639 = vmatprep.subr.bf16.mxu0 %v3638_v18 }
  0x4e   : > { %3641 = vmatpush3.bf16.msra.mxu0 %v3640_v21 }
  0x4f   : > { %3660 = vmatprep.subr.bf16.mxu0 %v3903_v53 }
  0x51   : > { %675 = vmatmul.mubr.f32.vlgmr.msra.gmra.mrb[2].mxu0 %v360_v44 }
  0x52   : > { %3424 = vmatprep.mubr.msk.f32.mxu0 %vm3904_vm2, %v3905_v57 }
 0x104   : > { %v3145_v26 = vpop.f32.mrb[0].mxu0 }
 0x105   : > { %v3146_v28 = vpop.f32.mrb[1].mxu0 }
 0x106   : > { %v3180_v29 = vpop.f32.mrb[0].mxu1  ;;  %v3147_v30 = vadd.f32 %v3146_v28, %v3145_v26 }
 0x107   : > { %v3181_v31 = vpop.f32.mrb[1].mxu1 }
 0x108   : > { %v3182_v32 = vadd.f32 %v3181_v31, %v3180_v29  ;;  %v537_v33 = vadd.f32 %v3147_v30, %v460_v27 }
 0x10a   : > { %v607_v34 = vadd.f32 %v3182_v32, %v537_v33 }
 0x124   : > { %v3215_v35 = vpop.f32.mrb[2].mxu0 }
 0x125   : > { %v3216_v36 = vpop.f32.mrb[3].mxu0 }
 0x126   : > { %v3217_v37 = vadd.f32 %v3216_v36, %v3215_v35 }
 0x128   : > { %v677_v38 = vadd.f32 %v3217_v37, %v607_v34 }
 0x12a   : > { %v684_v40 = vrot.slane %v677_v38, 7 }
 0x12c   : > { %v687_v42 = vsel %vm686_vm0, %v681_v39, %v684_v40 }
 0x12d   : > { %v4339_v43 = vadd.f32 %v688_v41, %v687_v42 }
 0x12f   : > { %v693_v44 = vsel %vm692_vm1, %v4339_v43, 0.0 }
 0x130   : > { %694 = vadd.xlane.f32.xlu0 %v693_v44 }
 0x1bd   : > { %v695_v45 = vpop.xlane.xlu0 %694 }
 0x1be   : > { %v697_v46 = vmul.f32 0.03125, %v695_v45 }
 0x1c0   : > { %v698_v47 = vsub.f32 %v4339_v43, %v697_v46 }
 0x1c2   : > { %v699_v48 = vmul.f32 %v698_v47, %v698_v47 }
 0x1c4   : > { %v700_v49 = vsel %vm692_vm1, %v699_v48, 0.0 }
 0x1c5   : > { %701 = vadd.xlane.f32.xlu0 %v700_v49 }
 0x252   : > { %v702_v58 = vpop.xlane.xlu0 %701 }
 0x253   : > { %v703_v59 = vmul.f32 0.03125, %v702_v58 }
 0x255   : > { %v704_v60 = vadd.f32 1e-06, %v703_v59 }
 0x257   : > { %3792 = vrsqrt.f32 %v704_v60 }
 0x261   : > { %v3793_v0 = vpop.eup %3792 }
 0x262   : > { %v706_v1 = vmul.f32 %v3793_v0, %v698_v47 }
 0x264   : > { %v711_v3 = vmul.f32 %v710_v63, %v706_v1 }
 0x266   : > { %v716_v4 = vadd.f32 %v715_v2, %v711_v3 }
 0x268   : > { %3328 = vmatmul.mubr.msk.f32.vlgmr.msra.gmra.mrb[2].mxu1 %vm725_vm3, %v716_v4 }
 0x269   : > { %3332 = vmatprep.mubr.msk.f32.mxu1 %vm3904_vm2, %v3905_v57 }
 0x33b   : > { %v795_v7 = vpop.f32.mrb[2].mxu1 }
 0x33c   : > { %v4384_v8 = vadd.f32 %v795_v7, %v724_v6  ;;  %v3329_v9 = vpop.f32.mrb[3].mxu1 }
 0x33e   : > { %891 = vrot.lane.b32.xlu0 %v4384_v8, %s3906_s28  ;;  %801 = vrot.lane.b32.xlu1 %v4384_v8, %s3907_s20  ;;  %v4394_v11 = vmul.f32 0.35355338, %v4384_v8 }
 0x342   : > { %972 = vrot.lane.b32.xlu0 %v4384_v8, %s3908_s25 }
 0x3b0   : > { %v802_v10 = vpop.permute.xlu1 %801  ;;  %v892_v12 = vpop.permute.xlu0 %891 }
 0x3b1   : > { %3331 = vmatpush3.xpose.msk.msra.mxu1 %vm803_vm4, %v802_v10 }
 0x3b2   : > { %3335 = vmatprep.subr.mxu1 %v3905_v57 }
 0x3b4   : > { %3333 = vmatmul.mubr.msk.f32.vlgmr.msra.gmra.mrb[4].mxu1 %vm803_vm4, %v4394_v11  ;;  %v973_v21 = vpop.permute.xlu0 %972 }
 0x3b5   : > { %3336 = vmatpush3.msk.msra.mxu1 %vm897_vm5, %v892_v12  ;;  %3337 = vmatprep.mubr.msk.f32.mxu1 %vm3904_vm2, %v3905_v57 }
 0x3b6   : > { %3340 = vmatprep.subr.mxu1 %v3905_v57 }
 0x487   : > { %v875_v13 = vpop.f32.mrb[4].mxu1 }
 0x488   : > { %v3334_v14 = vpop.f32.mrb[5].mxu1  ;;  %v880_v15 = vsel %vm879_vm6, %v875_v13, -inf }
 0x489   : > { %881 = vmax.xlane.f32.xlu1 %v880_v15 }
 0x516   : > { %v882_v16 = vpop.xlane.xlu1 %881 }
 0x517   : > { %v883_v17 = vsub.f32 %v875_v13, %v882_v16  ;;  %v1485_v16 = vld [vmem:[%s4895_s6] sm:$0xff] }
 0x519   : > { %v884_v18 = vmul.f32 1.442695, %v883_v17  ;;  %v1486_v17 = vld [vmem:[%s4895_s6 + $0x8] sm:$0xff] }
 0x51b   : > { %3794 = vpow2.f32 %v884_v18  ;;  %v1487_v18 = vld [vmem:[%s4895_s6 + $0x10] sm:$0xff] }
 0x525   : > { %v3795_v19 = vpop.eup %3794 }
 0x526   : > { %v886_v20 = vsel %vm879_vm6, %v3795_v19, 0.0 }
 0x527   : > { %887 = vadd.xlane.f32.xlu0 %v886_v20  ;;  %v1488_v20 = vld [vmem:[%s4895_s6 + $0x18] sm:$0xff] }
 0x53d   : > { %970 = vrot.lane.b32.xlu0 %v4394_v11, %s4910_s21 }
 0x5b4   : > { %v888_v22 = vpop.xlane.xlu0 %887 }
 0x5b5   : > { %3796 = vrcp.f32 %v888_v22 }
 0x5b8   : > { %v971_v27 = vpop.permute.xlu0 %970 }
 0x5bf   : > { %v3797_v25 = vpop.eup %3796 }
 0x5c0   : > { %v890_v26 = vmul.f32 %v3797_v25, %v3795_v19  ;;  %v3649_v19 = vpack.c.bf16 %v1486_v17, %v1485_v16  ;;  %v1693_v17 = vld [vmem:[%s4897_s8 + $0x40] sm:$0xff] }
 0x5c2   : > { %3338 = vmatmul.mubr.msk.f32.vlgmr.msra.gmra.mrb[6].mxu1 %vm893_vm7, %v890_v26 }
 0x5c3   : > { %3341 = vmatpush3.xpose.msk.msra.mxu1 %vm803_vm4, %v973_v21  ;;  %3342 = vmatprep.mubr.msk.f32.mxu1 %vm3904_vm2, %v3905_v57  ;;  %v3652_v21 = vpack.c.bf16 %v1488_v20, %v1487_v18  ;;  %v1694_v18 = vld [vmem:[%s4897_s8 + $0x48] sm:$0xff]  ;;  %v1695_v20 = vld [vmem:[%s4897_s8 + $0x50] sm:$0xff] }
 0x5c4   : > { %3345 = vmatprep.subr.mxu1 %v3905_v57 }
 0x5c6   : > { %3343 = vmatmul.mubr.msk.f32.vlgmr.msra.gmra.mrb[8].mxu1 %vm803_vm4, %v971_v27 }
 0x5c7   : > { %3347 = vmatprep.mubr.msk.f32.mxu1 %vm3904_vm2, %v3905_v57 }
 0x695   : > { %v4415_v28 = vpop.f32.mrb[6].mxu1 }
 0x696   : > { %v3339_v29 = vpop.f32.mrb[7].mxu1 }
 0x699   : > { %v1044_v30 = vpop.f32.mrb[8].mxu1 }
 0x69a   : > { %v3344_v31 = vpop.f32.mrb[9].mxu1  ;;  %v1048_v32 = vsel %vm879_vm6, %v1044_v30, -inf }
 0x69b   : > { %1049 = vmax.xlane.f32.xlu1 %v1048_v32 }
 0x6ac   : > { %1059 = vrot.lane.b32.xlu1 %v4384_v8, %s4908_s26  ;;  %s4917_s26 = smov 112  }
 0x6b0   : > { %1138 = vrot.lane.b32.xlu1 %v4384_v8, %s4907_s30  ;;  %s4918_s30 = smov 72  }
 0x6b4   : > { %1136 = vrot.lane.b32.xlu1 %v4394_v11, %s4906_s22  ;;  %s4919_s22 = smov 104  }
 0x728   : > { %v1050_v33 = vpop.xlane.xlu1 %1049 }
 0x729   : > { %v1051_v34 = vsub.f32 %v1044_v30, %v1050_v33  ;;  %v1491_v33 = vsub.s32 3, %v4327_v23 }
 0x72b   : > { %v1052_v35 = vmul.f32 1.442695, %v1051_v34  ;;  %v1568_v34 = vsub.s32 4, %v4327_v23 }
 0x72c   : > { %v1060_v36 = vpop.permute.xlu1 %1059 }
 0x72d   : > { %3798 = vpow2.f32 %v1052_v35  ;;  %3346 = vmatpush3.msk.msra.mxu1 %vm897_vm5, %v1060_v36  ;;  %v1492_v35 = vrot.slane %v4368_v61, %v1491_v33 }
 0x72e   : > { %3350 = vmatprep.subr.mxu1 %v3905_v57 }
 0x730   : > { %v1139_v41 = vpop.permute.xlu1 %1138 }
 0x734   : > { %v1137_v44 = vpop.permute.xlu1 %1136 }
 0x737   : > { %v3799_v37 = vpop.eup %3798 }
 0x738   : > { %v1054_v38 = vsel %vm879_vm6, %v3799_v37, 0.0 }
 0x739   : > { %1055 = vadd.xlane.f32.xlu0 %v1054_v38 }
 0x74f   : > { %1225 = vrot.lane.b32.xlu0 %v4384_v8, %s4900_s27  ;;  %s4901_s27 = smov 16  }
 0x753   : > { %1304 = vrot.lane.b32.xlu0 %v4384_v8, %s4905_s29  ;;  %s4920_s29 = smov 40  }
 0x7c6   : > { %v1056_v39 = vpop.xlane.xlu0 %1055 }
 0x7c7   : > { %3800 = vrcp.f32 %v1056_v39 }
 0x7ca   : > { %v1226_v45 = vpop.permute.xlu0 %1225 }
 0x7ce   : > { %v1305_v58 = vpop.permute.xlu0 %1304 }
 0x7d1   : > { %v3801_v40 = vpop.eup %3800 }
 0x7d2   : > { %v1058_v42 = vmul.f32 %v3801_v40, %v3799_v37 }
 0x7d4   : > { %3348 = vmatmul.mubr.msk.f32.vlgmr.msra.gmra.mrb[10].mxu1 %vm893_vm7, %v1058_v42 }
 0x7d5   : > { %3351 = vmatpush3.xpose.msk.msra.mxu1 %vm803_vm4, %v1139_v41  ;;  %3352 = vmatprep.mubr.msk.f32.mxu1 %vm3904_vm2, %v3905_v57 }
 0x7d6   : > { %3355 = vmatprep.subr.mxu1 %v3905_v57 }
 0x7d8   : > { %3353 = vmatmul.mubr.msk.f32.vlgmr.msra.gmra.mrb[12].mxu1 %vm803_vm4, %v1137_v44 }
 0x7d9   : > { %3356 = vmatpush3.msk.msra.mxu1 %vm897_vm5, %v1226_v45  ;;  %3357 = vmatprep.mubr.msk.f32.mxu1 %vm3904_vm2, %v3905_v57 }
 0x7da   : > { %3360 = vmatprep.subr.mxu1 %v3905_v57 }
 0x8a7   : > { %v1132_v46 = vpop.f32.mrb[10].mxu1 }
 0x8a8   : > { %v3349_v47 = vpop.f32.mrb[11].mxu1 }
 0x8ab   : > { %v1210_v48 = vpop.f32.mrb[12].mxu1 }
 0x8ac   : > { %v3354_v49 = vpop.f32.mrb[13].mxu1  ;;  %v1214_v50 = vsel %vm879_vm6, %v1210_v48, -inf }
 0x8ad   : > { %1215 = vmax.xlane.f32.xlu1 %v1214_v50  ;;  %v1597_v50 = vld [vmem:[%s4896_s7 + $0x10] sm:$0xff] }
 0x93a   : > { %v1216_v51 = vpop.xlane.xlu1 %1215 }
 0x93b   : > { %v1217_v52 = vsub.f32 %v1210_v48, %v1216_v51  ;;  %v1595_v48 = vld [vmem:[%s4896_s7] sm:$0xff]  ;;  %v1598_v51 = vld [vmem:[%s4896_s7 + $0x18] sm:$0xff] }
 0x93d   : > { %v1218_v54 = vmul.f32 1.442695, %v1217_v52  ;;  %v3658_v52 = vpack.c.bf16 %v1598_v51, %v1597_v50 }
 0x93f   : > { %3802 = vpow2.f32 %v1218_v54  ;;  %v1685_v54 = vld [vmem:[%s4897_s8] sm:$0xff] }
 0x949   : > { %v3803_v55 = vpop.eup %3802 }
 0x94a   : > { %v1220_v56 = vsel %vm879_vm6, %v3803_v55, 0.0 }
 0x94b   : > { %1221 = vadd.xlane.f32.xlu0 %v1220_v56 }
 0x961   : > { %1302 = vrot.lane.b32.xlu0 %v4394_v11, %s4904_s11  ;;  %s4922_s11 = smov 8  }
 0x9d8   : > { %v1222_v59 = vpop.xlane.xlu0 %1221 }
 0x9d9   : > { %3804 = vrcp.f32 %v1222_v59 }
 0x9dc   : > { %v1303_v0 = vpop.permute.xlu0 %1302 }
 0x9e3   : > { %v3805_v60 = vpop.eup %3804 }
 0x9e4   : > { %v1224_v63 = vmul.f32 %v3805_v60, %v3803_v55  ;;  %v1686_v55 = vld [vmem:[%s4897_s8 + $0x8] sm:$0xff] }
 0x9e5   : > { %v3661_v56 = vpack.c.bf16 %v1686_v55, %v1685_v54 }
 0x9e6   : > { %3358 = vmatmul.mubr.msk.f32.vlgmr.msra.gmra.mrb[14].mxu1 %vm893_vm7, %v1224_v63  ;;  %v1587_v63 = vsub.s32 5, %v4327_v23 }
 0x9e7   : > { %3361 = vmatpush3.xpose.msk.msra.mxu1 %vm803_vm4, %v1305_v58  ;;  %3362 = vmatprep.mubr.msk.f32.mxu1 %vm3904_vm2, %v3905_v57 }
 0x9e8   : > { %3365 = vmatprep.subr.mxu1 %v3905_v57  ;;  %3662 = vmatpush3.bf16.msra.mxu0 %v3661_v56 }
 0x9e9   : > { %3663 = vmatprep.subr.bf16.mxu0 %v3903_v53 }
 0x9ea   : > { %3363 = vmatmul.mubr.msk.f32.vlgmr.msra.gmra.mrb[16].mxu1 %vm803_vm4, %v1303_v0  ;;  %v1592_v0 = vsub.s32 6, %v4327_v23 }
 0x9eb   : > { %3367 = vmatprep.mubr.msk.f32.mxu1 %vm3904_vm2, %v3905_v57 }
 0xab9   : > { %v1298_v1 = vpop.f32.mrb[14].mxu1 }
 0xaba   : > { %v3359_v2 = vpop.f32.mrb[15].mxu1 }
 0xabd   : > { %v1376_v3 = vpop.f32.mrb[16].mxu1 }
 0xabe   : > { %v3364_v4 = vpop.f32.mrb[17].mxu1  ;;  %v1380_v6 = vsel %vm879_vm6, %v1376_v3, -inf }
 0xabf   : > { %1381 = vmax.xlane.f32.xlu1 %v1380_v6  ;;  %v1593_v4 = vrot.slane %v4368_v61, %v1592_v0 }
 0xad0   : > { %1391 = vrot.lane.b32.xlu1 %v4384_v8, %s4903_s12 }
 0xad4   : > { %1469 = vrot.lane.b32.xlu1 %v1132_v46, %s4902_s18  ;;  %s350_s18 = sand.u32 1, %s3893_s14  }
 0xad8   : > { %1473 = vrot.lane.b32.xlu1 %v1298_v1, %s4901_s27  ;;  %s4909_s27 = smov 24   ;;  %v1588_v1 = vrot.slane %v4368_v61, %v1587_v63 }
 0xb4c   : > { %v1382_v7 = vpop.xlane.xlu1 %1381 }
 0xb4d   : > { %v1383_v9 = vsub.f32 %v1376_v3, %v1382_v7 }
 0xb4f   : > { %v1384_v10 = vmul.f32 1.442695, %v1383_v9  ;;  %v1687_v9 = vld [vmem:[%s4897_s8 + $0x10] sm:$0xff] }
 0xb50   : > { %v1392_v11 = vpop.permute.xlu1 %1391 }
 0xb51   : > { %3806 = vpow2.f32 %v1384_v10  ;;  %3366 = vmatpush3.msk.msra.mxu1 %vm897_vm5, %v1392_v11  ;;  %v1688_v10 = vld [vmem:[%s4897_s8 + $0x18] sm:$0xff] }
 0xb52   : > { %3648 = vmatprep.subr.bf16.mxu1 %v3903_v53  ;;  %v3664_v11 = vpack.c.bf16 %v1688_v10, %v1687_v9 }
 0xb54   : > { %v1470_v26 = vpop.permute.xlu1 %1469  ;;  %3665 = vmatpush3.bf16.msra.mxu0 %v3664_v11 }
 0xb55   : > { %v1480_v29 = vsel %vm803_vm4, %v4415_v28, %v1470_v26  ;;  %v1569_v28 = vrot.slane %v4368_v61, %v1568_v34  ;;  %3666 = vmatprep.subr.bf16.mxu0 %v3903_v53  ;;  %v1698_v26 = vld [vmem:[%s4897_s8 + $0x68] sm:$0xff] }
 0xb58   : > { %v1474_v27 = vpop.permute.xlu1 %1473 }
 0xb59   : > { %v1482_v30 = vsel %vm1481_vm8, %v1480_v29, %v1474_v27  ;;  %v1699_v29 = vld [vmem:[%s4897_s8 + $0x70] sm:$0xff] }
 0xb5b   : > { %v3807_v12 = vpop.eup %3806 }
 0xb5c   : > { %v1386_v13 = vsel %vm879_vm6, %v3807_v12, 0.0 }
 0xb5d   : > { %1387 = vadd.xlane.f32.xlu0 %v1386_v13  ;;  %v1690_v13 = vld [vmem:[%s4897_s8 + $0x28] sm:$0xff] }
 0xbea   : > { %v1388_v8 = vpop.xlane.xlu0 %1387 }
 0xbeb   : > { %3808 = vrcp.f32 %v1388_v8 }
 0xbf5   : > { %v3809_v14 = vpop.eup %3808 }
 0xbf6   : > { %v1390_v15 = vmul.f32 %v3809_v14, %v3807_v12  ;;  %v1689_v12 = vld [vmem:[%s4897_s8 + $0x20] sm:$0xff]  ;;  %v1691_v14 = vld [vmem:[%s4897_s8 + $0x30] sm:$0xff] }
 0xbf7   : > { %v3667_v8 = vpack.c.bf16 %v1690_v13, %v1689_v12  ;;  %v4617_v13 = vld [vmem:[%s4898_s9 + $0x10] sm:$0xff] }
 0xbf8   : > { %3368 = vmatmul.mubr.msk.f32.vlgmr.msra.gmra.mrb[18].mxu1 %vm893_vm7, %v1390_v15  ;;  %v1692_v15 = vld [vmem:[%s4897_s8 + $0x38] sm:$0xff] }
 0xbf9   : > { %3378 = vmatprep.mubr.msk.f32.mxu1 %vm3904_vm2, %v3905_v57  ;;  %3650 = vmatpush3.bf16.msra.mxu1 %v3649_v19  ;;  %v3670_v16 = vpack.c.bf16 %v1692_v15, %v1691_v14  ;;  %v3673_v19 = vpack.c.bf16 %v1694_v18, %v1693_v17 }
 0xbfa   : > { %3651 = vmatprep.subr.bf16.mxu1 %v3903_v53  ;;  %3668 = vmatpush3.bf16.msra.mxu0 %v3667_v8  ;;  %v1800_v8 = vrot.slane %v4617_v13, %v4330_v24 }
 0xbfb   : > { %3669 = vmatprep.subr.bf16.mxu0 %v3903_v53 }
 0xbfd   : > { %3653 = vmatpush3.bf16.msra.mxu1 %v3652_v21  ;;  %v1696_v21 = vld [vmem:[%s4897_s8 + $0x58] sm:$0xff] }
 0xbfe   : > { %3654 = vmatprep.subr.bf16.mxu1 %v3903_v53  ;;  %3671 = vmatpush3.bf16.msra.mxu0 %v3670_v16  ;;  %v1805_v16 = vrot.slane %v4617_v13, %v4371_v62 }
 0xbff   : > { %3672 = vmatprep.subr.bf16.mxu0 %v3903_v53 }
 0xc02   : > { %3674 = vmatpush3.bf16.msra.mxu0 %v3673_v19  ;;  %v1815_v19 = vrot.slane %v4617_v13, %v723_v5 }
 0xc03   : > { %3675 = vmatprep.subr.bf16.mxu0 %v3903_v53 }
 0xccb   : > { %v1464_v22 = vpop.f32.mrb[18].mxu1 }
 0xccc   : > { %1477 = vrot.lane.b32.xlu1 %v1464_v22, %s4909_s27  ;;  %v3369_v25 = vpop.f32.mrb[19].mxu1  ;;  %v3676_v22 = vpack.c.bf16 %v1696_v21, %v1695_v20  ;;  %s4921_s27 = smov 48  }
 0xccd   : > { %v1697_v25 = vld [vmem:[%s4897_s8 + $0x60] sm:$0xff] }
 0xcce   : > { %3677 = vmatpush3.bf16.msra.mxu0 %v3676_v22  ;;  %v3679_v27 = vpack.c.bf16 %v1698_v26, %v1697_v25 }
 0xccf   : > { %3678 = vmatprep.subr.bf16.mxu0 %v3903_v53 }
 0xcd2   : > { %3680 = vmatpush3.bf16.msra.mxu0 %v3679_v27 }
 0xcd3   : > { %3681 = vmatprep.subr.bf16.mxu0 %v3903_v53 }
 0xd3e   : > { %v1478_v31 = vpop.permute.xlu1 %1477 }
 0xd3f   : > { %v1484_v32 = vsel %vm1483_vm9, %v1482_v30, %v1478_v31  ;;  %v1700_v30 = vld [vmem:[%s4897_s8 + $0x78] sm:$0xff] }
 0xd40   : > { %3379 = vmatmul.mubr.msk.f32.vlgmr.msra.gmra.mrb[20].mxu1 %vm725_vm3, %v1484_v32  ;;  %v3682_v31 = vpack.c.bf16 %v1700_v30, %v1699_v29  ;;  %v1601_v32 = vsub.s32 7, %v4327_v23  ;;  %v3061_v23 = vld [vmem:[%s4898_s9 + $0x18] sm:$0xff] }
 0xd41   : > { %3389 = vmatprep.mubr.msk.f32.mxu1 %vm3904_vm2, %v3905_v57 }
 0xd42   : > { %3683 = vmatpush3.bf16.msra.mxu0 %v3682_v31 }
 0xd43   : > { %3468 = vmatprep.subr.mxu0 %v3905_v57 }
 0xe13   : > { %v1562_v36 = vpop.f32.mrb[20].mxu1 }
 0xe14   : > { %v1563_v37 = vadd.f32 %v1562_v36, %v1492_v35  ;;  %v3380_v38 = vpop.f32.mrb[21].mxu1  ;;  %v1602_v35 = vrot.slane %v4368_v61, %v1601_v32  ;;  %v691_v61 = vld [vmem:[%s4898_s9 + $0x8] sm:$0xff] }
 0xe16   : > { %v1570_v39 = vmul.f32 %v1569_v28, %v1563_v37 }
 0xe18   : > { %v4495_v40 = vadd.f32 %v1570_v39, %v4339_v43  ;;  %v1596_v43 = vld [vmem:[%s4896_s7 + $0x8] sm:$0xff] }
 0xe19   : > { %v3655_v49 = vpack.c.bf16 %v1596_v43, %v1595_v48  ;;  %v1704_v43 = vrot.slane %v691_v61, %v4330_v24 }
 0xe1a   : > { %v1572_v41 = vsel %vm692_vm1, %v4495_v40, 0.0 }
 0xe1b   : > { %1573 = vadd.xlane.f32.xlu0 %v1572_v41  ;;  %3656 = vmatpush3.bf16.msra.mxu1 %v3655_v49  ;;  %v1778_v49 = vrot.slane %v691_v61, %v4371_v62 }
 0xe1c   : > { %3657 = vmatprep.subr.bf16.mxu1 %v3903_v53 }
 0xe1f   : > { %3659 = vmatpush3.bf16.msra.mxu1 %v3658_v52 }
 0xe20   : > { %3684 = vmatprep.subr.bf16.mxu1 %v3903_v53 }
 0xea8   : > { %v1574_v42 = vpop.xlane.xlu0 %1573 }
 0xea9   : > { %v1575_v44 = vmul.f32 0.03125, %v1574_v42 }
 0xeab   : > { %v1576_v45 = vsub.f32 %v4495_v40, %v1575_v44 }
 0xead   : > { %v1577_v46 = vmul.f32 %v1576_v45, %v1576_v45 }
 0xeaf   : > { %v1578_v47 = vsel %vm692_vm1, %v1577_v46, 0.0 }
 0xeb0   : > { %1579 = vadd.xlane.f32.xlu1 %v1578_v47 }
 0xf3d   : > { %v1580_v58 = vpop.xlane.xlu1 %1579 }
 0xf3e   : > { %v1581_v59 = vmul.f32 0.03125, %v1580_v58 }
 0xf40   : > { %v1582_v60 = vadd.f32 1e-06, %v1581_v59 }
 0xf42   : > { %3810 = vrsqrt.f32 %v1582_v60 }
 0xf4c   : > { %v3811_v2 = vpop.eup %3810 }
 0xf4d   : > { %v1584_v3 = vmul.f32 %v3811_v2, %v1576_v45 }
 0xf4f   : > { %v1589_v6 = vmul.f32 %v1588_v1, %v1584_v3  ;;  %v3062_v3 = vld [vmem:[%s4894_s5 + $0x20] sm:$0xff] }
 0xf51   : > { %v1594_v7 = vadd.f32 %v1593_v4, %v1589_v6  ;;  %v3064_v6 = vld [vmem:[%s4894_s5 + $0x30] sm:$0xff] }
 0xf53   : > { %3390 = vmatmul.mubr.msk.f32.vlgmr.msra.gmra.mrb[22].mxu1 %vm725_vm3, %v1594_v7  ;;  %v3065_v7 = vld [vmem:[%s4894_s5 + $0x38] sm:$0xff] }
 0xf54   : > { %3435 = vmatprep.mubr.msk.f32.mxu1 %vm3904_vm2, %v3905_v57  ;;  %v3688_v9 = vpack.c.bf16 %v3065_v7, %v3064_v6 }
0x1026   : > { %v1672_v28 = vpop.f32.mrb[22].mxu1 }
0x1027   : > { %v1673_v36 = vadd.f32 %v1672_v28, %v1602_v35  ;;  %v3391_v37 = vpop.f32.mrb[23].mxu1 }
0x1029   : > { %v1677_v38 = vmul.f32 0.044715, %v1673_v36  ;;  %v1676_v46 = vmul.f32 0.5, %v1673_v36 }
0x102b   : > { %v1678_v39 = vmul.f32 %v1677_v38, %v1673_v36 }
0x102d   : > { %v1679_v41 = vmul.f32 %v1678_v39, %v1673_v36 }
0x102f   : > { %v1680_v42 = vadd.f32 %v1679_v41, %v1673_v36 }
0x1031   : > { %v1681_v44 = vmul.f32 0.7978846, %v1680_v42 }
0x1033   : > { %3812 = vtanh.f32 %v1681_v44 }
0x103d   : > { %v3813_v45 = vpop.eup %3812 }
0x103e   : > { %v1683_v47 = vadd.f32 1.0, %v3813_v45 }
0x1040   : > { %v1684_v48 = vmul.f32 %v1683_v47, %v1676_v46 }
0x1042   : > { %3425 = vmatmul.mubr.f32.vlgmr.msra.gmra.mrb[4].mxu0 %v1684_v48 }
0x1043   : > { %3470 = vmatprep.mubr.msk.f32.mxu0 %vm3904_vm2, %v3905_v57 }
0x1115   : > { %v1771_v50 = vpop.f32.mrb[4].mxu0 }
0x1116   : > { %v1772_v51 = vadd.f32 %v1771_v50, %v1704_v43  ;;  %v3426_v52 = vpop.f32.mrb[5].mxu0 }
0x1118   : > { %v1779_v54 = vmul.f32 %v1778_v49, %v1772_v51 }
0x111a   : > { %v4594_v55 = vadd.f32 %v1779_v54, %v4495_v40  ;;  %v3063_v40 = vld [vmem:[%s4894_s5 + $0x28] sm:$0xff] }
0x111b   : > { %v3685_v4 = vpack.c.bf16 %v3063_v40, %v3062_v3 }
0x111c   : > { %v1784_v56 = vsel %vm692_vm1, %v4594_v55, 0.0 }
0x111d   : > { %1785 = vadd.xlane.f32.xlu0 %v1784_v56  ;;  %3686 = vmatpush3.bf16.msra.mxu1 %v3685_v4 }
0x111e   : > { %3687 = vmatprep.subr.bf16.mxu1 %v3903_v53 }
0x1121   : > { %3689 = vmatpush3.bf16.msra.mxu1 %v3688_v9 }
0x1122   : > { %3438 = vmatprep.subr.mxu1 %v3905_v57 }
0x11aa   : > { %v1786_v58 = vpop.xlane.xlu0 %1785 }
0x11ab   : > { %v1787_v59 = vmul.f32 0.03125, %v1786_v58 }
0x11ad   : > { %v1788_v60 = vsub.f32 %v4594_v55, %v1787_v59 }
0x11af   : > { %v1789_v1 = vmul.f32 %v1788_v60, %v1788_v60 }
0x11b1   : > { %v1790_v2 = vsel %vm692_vm1, %v1789_v1, 0.0 }
0x11b2   : > { %1791 = vadd.xlane.f32.xlu0 %v1790_v2 }
0x123f   : > { %v1792_v10 = vpop.xlane.xlu0 %1791 }
0x1240   : > { %v1793_v11 = vmul.f32 0.03125, %v1792_v10 }
0x1242   : > { %v1794_v12 = vadd.f32 1e-06, %v1793_v11 }
0x1244   : > { %3814 = vrsqrt.f32 %v1794_v12 }
0x124e   : > { %v3815_v14 = vpop.eup %3814 }
0x124f   : > { %v1796_v15 = vmul.f32 %v3815_v14, %v1788_v60 }
0x1251   : > { %v1801_v17 = vmul.f32 %v1800_v8, %v1796_v15 }
0x1253   : > { %v1806_v18 = vadd.f32 %v1805_v16, %v1801_v17 }
0x1255   : > { %3436 = vmatmul.mubr.msk.f32.vlgmr.msra.gmra.mrb[24].mxu1 %vm725_vm3, %v1806_v18 }
0x1256   : > { %3440 = vmatprep.mubr.msk.f32.mxu1 %vm3904_vm2, %v3905_v57 }
0x1328   : > { %v1885_v20 = vpop.f32.mrb[24].mxu1 }
0x1329   : > { %v4629_v21 = vadd.f32 %v1885_v20, %v1815_v19  ;;  %v3437_v22 = vpop.f32.mrb[25].mxu1 }
0x132b   : > { %1979 = vrot.lane.b32.xlu1 %v4629_v21, %s3906_s28  ;;  %1891 = vrot.lane.b32.xlu0 %v4629_v21, %s3907_s20  ;;  %v1889_v26 = vmul.f32 0.35355338, %v4629_v21  ;;  %s4914_s28 = smov 120   ;;  %s4915_s20 = smov 56  }
0x132f   : > { %2058 = vrot.lane.b32.xlu1 %v4629_v21, %s3908_s25  ;;  %s4916_s25 = smov 80  }
0x139d   : > { %v1892_v25 = vpop.permute.xlu0 %1891  ;;  %v1980_v5 = vpop.permute.xlu1 %1979 }
0x139e   : > { %3439 = vmatpush3.xpose.msk.msra.mxu1 %vm803_vm4, %v1892_v25 }
0x139f   : > { %3443 = vmatprep.subr.mxu1 %v3905_v57 }
0x13a1   : > { %3441 = vmatmul.mubr.msk.f32.vlgmr.msra.gmra.mrb[26].mxu1 %vm803_vm4, %v1889_v26  ;;  %v2059_v38 = vpop.permute.xlu1 %2058 }
0x13a2   : > { %3444 = vmatpush3.msk.msra.mxu1 %vm897_vm5, %v1980_v5  ;;  %3445 = vmatprep.mubr.msk.f32.mxu1 %vm3904_vm2, %v3905_v57 }
0x13a3   : > { %3448 = vmatprep.subr.mxu1 %v3905_v57 }
0x1474   : > { %v1964_v27 = vpop.f32.mrb[26].mxu1 }
0x1475   : > { %v3442_v29 = vpop.f32.mrb[27].mxu1  ;;  %v1968_v30 = vsel %vm879_vm6, %v1964_v27, -inf }
0x1476   : > { %1969 = vmax.xlane.f32.xlu0 %v1968_v30 }
0x1503   : > { %v1970_v31 = vpop.xlane.xlu0 %1969 }
0x1504   : > { %v1971_v35 = vsub.f32 %v1964_v27, %v1970_v31 }
0x1506   : > { %v1972_v28 = vmul.f32 1.442695, %v1971_v35 }
0x1508   : > { %3816 = vpow2.f32 %v1972_v28  ;;  %v3083_v28 = vld [vmem:[%s4895_s6 + $0x20] sm:$0xff] }
0x1512   : > { %v3817_v36 = vpop.eup %3816 }
0x1513   : > { %v1974_v37 = vsel %vm879_vm6, %v3817_v36, 0.0 }
0x1514   : > { %1975 = vadd.xlane.f32.xlu1 %v1974_v37 }
0x1525   : > { %2056 = vrot.lane.b32.xlu1 %v1889_v26, %s4914_s28  ;;  %s3110_s28 = sshll.u32 %s3997_s17, 4  ;;  %s3920_s17 = smov [#allocation2]  }
0x15a1   : > { %v1976_v39 = vpop.xlane.xlu1 %1975 }
0x15a2   : > { %3818 = vrcp.f32 %v1976_v39  ;;  %v3086_v39 = vld [vmem:[%s4895_s6 + $0x38] sm:$0xff] }
0x15a5   : > { %v2057_v44 = vpop.permute.xlu1 %2056 }
0x15ac   : > { %v3819_v41 = vpop.eup %3818 }
0x15ad   : > { %v1978_v42 = vmul.f32 %v3819_v41, %v3817_v36  ;;  %v3084_v36 = vld [vmem:[%s4895_s6 + $0x28] sm:$0xff] }
0x15ae   : > { %v3691_v37 = vpack.c.bf16 %v3084_v36, %v3083_v28  ;;  %v3103_v36 = vld [vmem:[%s4897_s8 + $0xd0] sm:$0xff] }
0x15af   : > { %3446 = vmatmul.mubr.msk.f32.vlgmr.msra.gmra.mrb[28].mxu1 %vm893_vm7, %v1978_v42 }
0x15b0   : > { %3449 = vmatpush3.xpose.msk.msra.mxu1 %vm803_vm4, %v2059_v38  ;;  %3450 = vmatprep.mubr.msk.f32.mxu1 %vm3904_vm2, %v3905_v57  ;;  %v3085_v38 = vld [vmem:[%s4895_s6 + $0x30] sm:$0xff] }
0x15b1   : > { %3453 = vmatprep.subr.mxu1 %v3905_v57  ;;  %v3694_v41 = vpack.c.bf16 %v3086_v39, %v3085_v38  ;;  %v3105_v39 = vld [vmem:[%s4897_s8 + $0xe0] sm:$0xff] }
0x15b3   : > { %3451 = vmatmul.mubr.msk.f32.vlgmr.msra.gmra.mrb[30].mxu1 %vm803_vm4, %v2057_v44 }
0x15b4   : > { %3455 = vmatprep.mubr.msk.f32.mxu1 %vm3904_vm2, %v3905_v57 }
0x1682   : > { %v4656_v45 = vpop.f32.mrb[28].mxu1 }
0x1683   : > { %v3447_v46 = vpop.f32.mrb[29].mxu1 }
0x1686   : > { %v2130_v47 = vpop.f32.mrb[30].mxu1 }
0x1687   : > { %v3452_v48 = vpop.f32.mrb[31].mxu1  ;;  %v2134_v61 = vsel %vm879_vm6, %v2130_v47, -inf }
0x1688   : > { %2135 = vmax.xlane.f32.xlu0 %v2134_v61 }
0x169e   : > { %2145 = vrot.lane.b32.xlu0 %v4629_v21, %s4915_s20  ;;  %s351_s20 = scalar_lea.vmem [#allocation2], %s350_s18 }
0x16a2   : > { %2224 = vrot.lane.b32.xlu0 %v4629_v21, %s4916_s25  ;;  %s2981_s25 = sshll.u32 %s351_s20, 4  ;;  %s4849_s25 = int_to_ptr.vmem [resolvable:$true] %s2981_s25 }
0x16a6   : > { %2222 = vrot.lane.b32.xlu0 %v1889_v26, %s4917_s26 }
0x16aa   : > { %2390 = vrot.lane.b32.xlu0 %v4629_v21, %s4918_s30 }
0x1715   : > { %v2136_v43 = vpop.xlane.xlu0 %2135 }
0x1716   : > { %v2137_v49 = vsub.f32 %v2130_v47, %v2136_v43 }
0x1718   : > { %v2138_v50 = vmul.f32 1.442695, %v2137_v49 }
0x1719   : > { %v2146_v51 = vpop.permute.xlu0 %2145 }
0x171a   : > { %3820 = vpow2.f32 %v2138_v50  ;;  %3454 = vmatpush3.msk.msra.mxu1 %vm897_vm5, %v2146_v51 }
0x171b   : > { %3458 = vmatprep.subr.mxu1 %v3905_v57 }
0x171d   : > { %v2225_v52 = vpop.permute.xlu0 %2224 }
0x1721   : > { %v2223_v54 = vpop.permute.xlu0 %2222 }
0x1724   : > { %v3821_v56 = vpop.eup %3820 }
0x1725   : > { %v2391_v58 = vpop.permute.xlu0 %2390  ;;  %v2140_v59 = vsel %vm879_vm6, %v3821_v56, 0.0 }
0x1726   : > { %2141 = vadd.xlane.f32.xlu1 %v2140_v59  ;;  %3469 = vmatpush3.xpose.msk.msra.mxu0 %vm803_vm4, %v2391_v58 }
0x1727   : > { %3690 = vmatprep.subr.bf16.mxu0 %v3903_v53 }
0x1737   : > { %2388 = vrot.lane.b32.xlu1 %v1889_v26, %s4919_s22  ;;  %s4923_s22 = smov 16  }
0x17b3   : > { %v2142_v60 = vpop.xlane.xlu1 %2141 }
0x17b4   : > { %3822 = vrcp.f32 %v2142_v60 }
0x17b7   : > { %v2389_v1 = vpop.permute.xlu1 %2388 }
0x17b8   : > { %3471 = vmatmul.mubr.msk.f32.vlgmr.msra.gmra.mrb[6].mxu0 %vm803_vm4, %v2389_v1 }
0x17b9   : > { %3486 = vmatprep.mubr.msk.f32.mxu0 %vm3904_vm2, %v3905_v57  ;;  %3692 = vmatpush3.bf16.msra.mxu0 %v3691_v37  ;;  %v3104_v37 = vld [vmem:[%s4897_s8 + $0xd8] sm:$0xff] }
0x17ba   : > { %3693 = vmatprep.subr.bf16.mxu0 %v3903_v53  ;;  %v3718_v38 = vpack.c.bf16 %v3104_v37, %v3103_v36 }
0x17bd   : > { %3695 = vmatpush3.bf16.msra.mxu0 %v3694_v41  ;;  %v3106_v41 = vld [vmem:[%s4897_s8 + $0xe8] sm:$0xff] }
0x17be   : > { %v3823_v2 = vpop.eup %3822  ;;  %3702 = vmatprep.subr.bf16.mxu0 %v3903_v53 }
0x17bf   : > { %v2144_v3 = vmul.f32 %v3823_v2, %v3821_v56 }
0x17c1   : > { %3456 = vmatmul.mubr.msk.f32.vlgmr.msra.gmra.mrb[32].mxu1 %vm893_vm7, %v2144_v3 }
0x17c2   : > { %3459 = vmatpush3.xpose.msk.msra.mxu1 %vm803_vm4, %v2225_v52  ;;  %3460 = vmatprep.mubr.msk.f32.mxu1 %vm3904_vm2, %v3905_v57  ;;  %v2577_v52 = vrot.slane %v4617_v13, %v1491_v33 }
0x17c3   : > { %3463 = vmatprep.subr.mxu1 %v3905_v57 }
0x17c5   : > { %3461 = vmatmul.mubr.msk.f32.vlgmr.msra.gmra.mrb[34].mxu1 %vm803_vm4, %v2223_v54  ;;  %v2654_v54 = vrot.slane %v4617_v13, %v1568_v34  ;;  %v3088_v34 = vld [vmem:[%s4896_s7 + $0x20] sm:$0xff] }
0x17c6   : > { %3465 = vmatprep.mubr.msk.f32.mxu1 %vm3904_vm2, %v3905_v57 }
0x188b   : > { %v2462_v40 = vpop.f32.mrb[6].mxu0 }
0x188c   : > { %v3472_v4 = vpop.f32.mrb[7].mxu0  ;;  %v2466_v6 = vsel %vm879_vm6, %v2462_v40, -inf }
0x188d   : > { %2467 = vmax.xlane.f32.xlu1 %v2466_v6 }
0x1894   : > { %v2218_v7 = vpop.f32.mrb[32].mxu1 }
0x1895   : > { %v3457_v9 = vpop.f32.mrb[33].mxu1 }
0x1896   : > { %v3091_v9 = vld [vmem:[%s4896_s7 + $0x38] sm:$0xff] }
0x1898   : > { %v2296_v10 = vpop.f32.mrb[34].mxu1 }
0x1899   : > { %v3462_v11 = vpop.f32.mrb[35].mxu1  ;;  %v2300_v12 = vsel %vm879_vm6, %v2296_v10, -inf }
0x189a   : > { %2301 = vmax.xlane.f32.xlu0 %v2300_v12  ;;  %v3093_v11 = vld [vmem:[%s4897_s8 + $0x80] sm:$0xff]  ;;  %v3094_v12 = vld [vmem:[%s4897_s8 + $0x88] sm:$0xff] }
0x189e   : > { %2477 = vrot.lane.b32.xlu1 %v4629_v21, %s4920_s29  ;;  %s4924_s29 = smov 24  }
0x191a   : > { %v2468_v8 = vpop.xlane.xlu1 %2467 }
0x191b   : > { %v2469_v14 = vsub.f32 %v2462_v40, %v2468_v8  ;;  %v3703_v8 = vpack.c.bf16 %v3094_v12, %v3093_v11  ;;  %v2891_v12 = vld [vmem:[%s4892_s3 + $0x18] sm:$0xff] }
0x191d   : > { %v2470_v15 = vmul.f32 1.442695, %v2469_v14 }
0x191e   : > { %v2478_v35 = vpop.permute.xlu1 %2477 }
0x191f   : > { %3824 = vpow2.f32 %v2470_v15 }
0x1927   : > { %v2302_v16 = vpop.xlane.xlu0 %2301 }
0x1928   : > { %v2303_v17 = vsub.f32 %v2296_v10, %v2302_v16 }
0x1929   : > { %v3825_v18 = vpop.eup %3824 }
0x192a   : > { %v2304_v19 = vmul.f32 1.442695, %v2303_v17  ;;  %v2472_v20 = vsel %vm879_vm6, %v3825_v18, 0.0  ;;  %v2673_v17 = vrot.slane %v4617_v13, %v1587_v63  ;;  %v3096_v63 = vld [vmem:[%s4897_s8 + $0x98] sm:$0xff] }
0x192b   : > { %2473 = vadd.xlane.f32.xlu0 %v2472_v20  ;;  %v2678_v20 = vrot.slane %v4617_v13, %v1592_v0  ;;  %v3097_v0 = vld [vmem:[%s4897_s8 + $0xa0] sm:$0xff] }
0x192c   : > { %3826 = vpow2.f32 %v2304_v19 }
0x1936   : > { %v3827_v22 = vpop.eup %3826 }
0x1937   : > { %v2306_v25 = vsel %vm879_vm6, %v3827_v22, 0.0 }
0x1938   : > { %2307 = vadd.xlane.f32.xlu0 %v2306_v25 }
0x194e   : > { %2311 = vrot.lane.b32.xlu0 %v4629_v21, %s4921_s27  ;;  %s3839_s27 = scalar_lea.vmem %s4849_s25, 16 }
0x194f   : > { %p3840_p11 = scmp.ne.s32.totalorder %s4849_s25, %s3839_s27 }
0x1951   : > { %p3841_p12 = pnand %p3840_p11, %p4014_p5 }
0x1952   : > { %2555 = vrot.lane.b32.xlu0 %v2218_v7, %s4922_s11  ;;  %v3090_v7 = vld [vmem:[%s4896_s7 + $0x30] sm:$0xff]  ;;  %s3843_s11 = sshll.u32 %s3920_s17, 4  ;;  %s3844_s11 = int_to_ptr.vmem [resolvable:$false] %s3843_s11 }
0x1953   : > { %v3700_v10 = vpack.c.bf16 %v3091_v9, %v3090_v7  ;;  %p3842_p13 = pneg %p3841_p12  ;;  %s3845_s12 = scalar_lea.vmem %s3844_s11, 32 }
0x1954   : > { %p3846_p0 = scmp.lt.s32.totalorder %s4849_s25, %s3844_s11  ;;  %p3847_p1 = scmp.lt.s32.totalorder %s3845_s12, %s3839_s27 }
0x1956   : > { %p3848_p2 = por %p3847_p1, %p3846_p0 }
0x1958   : > { %p3849_p3 = pnand %p3848_p2, %p3842_p13 }
0x19b8   : > { %v2474_v26 = vpop.xlane.xlu0 %2473 }
0x19c5   : > { %v2308_v5 = vpop.xlane.xlu0 %2307 }
0x19c6   : > { %3828 = vrcp.f32 %v2308_v5 }
0x19c7   : > { %3830 = vrcp.f32 %v2474_v26  ;;  %v3095_v26 = vld [vmem:[%s4897_s8 + $0x90] sm:$0xff] }
0x19c8   : > { %v3706_v5 = vpack.c.bf16 %v3096_v63, %v3095_v26 }
0x19c9   : > { %v2312_v27 = vpop.permute.xlu0 %2311 }
0x19ca   : > { %3464 = vmatpush3.msk.msra.mxu1 %vm897_vm5, %v2312_v27 }
0x19cb   : > { %3473 = vmatprep.subr.mxu1 %v3905_v57 }
0x19cd   : > { %v2556_v48 = vpop.permute.xlu0 %2555 }
0x19ce   : > { %v2566_v43 = vsel %vm803_vm4, %v4656_v45, %v2556_v48  ;;  %v2688_v48 = vrot.slane %v4617_v13, %v1601_v32  ;;  %v2791_v32 = vrot.slane %v3061_v23, %v4330_v24  ;;  %v2865_v13 = vrot.slane %v3061_v23, %v4371_v62  ;;  %v2888_v24 = vld [vmem:[%s4892_s3] sm:$0xff]  ;;  %v2889_v62 = vld [vmem:[%s4892_s3 + $0x8] sm:$0xff] }
0x19cf   : > { %v3727_v11 = vpack.c.bf16 %v2889_v62, %v2888_v24 }
0x19d0   : > { %v3829_v29 = vpop.eup %3828 }
0x19d1   : > { %v2310_v30 = vmul.f32 %v3829_v29, %v3827_v22  ;;  %v3831_v31 = vpop.eup %3830  ;;  %v3099_v29 = vld [vmem:[%s4897_s8 + $0xb0] sm:$0xff] }
0x19d2   : > { %v2476_v21 = vmul.f32 %v3831_v31, %v3825_v18 }
0x19d3   : > { %3466 = vmatmul.mubr.msk.f32.vlgmr.msra.gmra.mrb[36].mxu1 %vm893_vm7, %v2310_v30  ;;  %v3100_v30 = vld [vmem:[%s4897_s8 + $0xb8] sm:$0xff] }
0x19d4   : > { %3474 = vmatpush3.msk.msra.mxu1 %vm897_vm5, %v2478_v35  ;;  %3475 = vmatprep.mubr.msk.f32.mxu1 %vm3904_vm2, %v3905_v57  ;;  %v3712_v31 = vpack.c.bf16 %v3100_v30, %v3099_v29  ;;  %v3101_v35 = vld [vmem:[%s4897_s8 + $0xc0] sm:$0xff] }
0x19d5   : > { %3696 = vmatprep.subr.bf16.mxu1 %v3903_v53 }
0x19d7   : > { %3476 = vmatmul.mubr.msk.f32.vlgmr.msra.gmra.mrb[38].mxu1 %vm893_vm7, %v2476_v21  ;;  %v3102_v21 = vld [vmem:[%s4897_s8 + $0xc8] sm:$0xff] }
0x19d8   : > { %3497 = vmatprep.mubr.msk.f32.mxu1 %vm3904_vm2, %v3905_v57  ;;  %v3715_v28 = vpack.c.bf16 %v3102_v21, %v3101_v35 }
0x1aa6   : > { %v2384_v42 = vpop.f32.mrb[36].mxu1 }
0x1aa7   : > { %2559 = vrot.lane.b32.xlu0 %v2384_v42, %s4923_s22  ;;  %v3467_v44 = vpop.f32.mrb[37].mxu1  ;;  %v3721_v42 = vpack.c.bf16 %v3106_v41, %v3105_v39  ;;  %s4847_s22 = scalar_lea.hbm %s4899_s10, %s3110_s28 }
0x1aa8   : > { %v3107_v44 = vld [vmem:[%s4897_s8 + $0xf0] sm:$0xff] }
0x1aaa   : > { %v2550_v46 = vpop.f32.mrb[38].mxu1 }
0x1aab   : > { %2563 = vrot.lane.b32.xlu1 %v2550_v46, %s4924_s29  ;;  %v3477_v47 = vpop.f32.mrb[39].mxu1  ;;  %v3108_v46 = vld [vmem:[%s4897_s8 + $0xf8] sm:$0xff]  ;;  %s2969_s29 = scalar_lea.sflag [#allocation3], %s350_s18 }
0x1aac   : > { %v3724_v47 = vpack.c.bf16 %v3108_v46, %v3107_v44 }
0x1b19   : > { %v2560_v61 = vpop.permute.xlu0 %2559 }
0x1b1a   : > { %v2567_v49 = vsel %vm1481_vm8, %v2566_v43, %v2560_v61 }
0x1b1d   : > { %v2564_v50 = vpop.permute.xlu1 %2563 }
0x1b1e   : > { %v2568_v51 = vsel %vm1483_vm9, %v2567_v49, %v2564_v50 }
0x1b1f   : > { %3487 = vmatmul.mubr.msk.f32.vlgmr.msra.gmra.mrb[8].mxu0 %vm725_vm3, %v2568_v51 }
0x1b20   : > { %3532 = vmatprep.mubr.msk.f32.mxu0 %vm3904_vm2, %v3905_v57  ;;  %3704 = vmatpush3.bf16.msra.mxu0 %v3703_v8 }
0x1b21   : > { %3705 = vmatprep.subr.bf16.mxu0 %v3903_v53 }
0x1b24   : > { %3707 = vmatpush3.bf16.msra.mxu0 %v3706_v5 }
0x1b25   : > { %3708 = vmatprep.subr.bf16.mxu0 %v3903_v53 }
0x1bf2   : > { %v2647_v56 = vpop.f32.mrb[8].mxu0 }
0x1bf3   : > { %v2648_v45 = vadd.f32 %v2647_v56, %v2577_v52  ;;  %v3488_v58 = vpop.f32.mrb[9].mxu0 }
0x1bf5   : > { %v2655_v59 = vmul.f32 %v2654_v54, %v2648_v45 }
0x1bf7   : > { %v4732_v60 = vadd.f32 %v2655_v59, %v4594_v55  ;;  %v3089_v55 = vld [vmem:[%s4896_s7 + $0x28] sm:$0xff] }
0x1bf8   : > { %v3697_v6 = vpack.c.bf16 %v3089_v55, %v3088_v34 }
0x1bf9   : > { %v2657_v1 = vsel %vm692_vm1, %v4732_v60, 0.0 }
0x1bfa   : > { %2658 = vadd.xlane.f32.xlu0 %v2657_v1  ;;  %3698 = vmatpush3.bf16.msra.mxu1 %v3697_v6 }
0x1bfb   : > { %3699 = vmatprep.subr.bf16.mxu1 %v3903_v53 }
0x1bfe   : > { %3701 = vmatpush3.bf16.msra.mxu1 %v3700_v10 }
0x1bff   : > { %3726 = vmatprep.subr.bf16.mxu1 %v3903_v53 }
0x1c87   : > { %v2659_v2 = vpop.xlane.xlu0 %2658 }
0x1c88   : > { %v2660_v3 = vmul.f32 0.03125, %v2659_v2 }
0x1c8a   : > { %v2661_v40 = vsub.f32 %v4732_v60, %v2660_v3 }
0x1c8c   : > { %v2662_v33 = vmul.f32 %v2661_v40, %v2661_v40 }
0x1c8e   : > { %v2663_v4 = vsel %vm692_vm1, %v2662_v33, 0.0 }
0x1c8f   : > { %2664 = vadd.xlane.f32.xlu1 %v2663_v4 }
0x1d1c   : > { %v2665_v14 = vpop.xlane.xlu1 %2664 }
0x1d1d   : > { %v2666_v15 = vmul.f32 0.03125, %v2665_v14 }
0x1d1f   : > { %v2667_v16 = vadd.f32 1e-06, %v2666_v15 }
0x1d21   : > { %3832 = vrsqrt.f32 %v2667_v16 }
0x1d2b   : > { %v3833_v18 = vpop.eup %3832 }
0x1d2c   : > { %v2669_v19 = vmul.f32 %v3833_v18, %v2661_v40 }
0x1d2e   : > { %v2674_v22 = vmul.f32 %v2673_v17, %v2669_v19 }
0x1d30   : > { %v2679_v25 = vadd.f32 %v2678_v20, %v2674_v22 }
0x1d32   : > { %3498 = vmatmul.mubr.msk.f32.vlgmr.msra.gmra.mrb[40].mxu1 %vm725_vm3, %v2679_v25 }
0x1d33   : > { %3543 = vmatprep.mubr.msk.f32.mxu1 %vm3904_vm2, %v3905_v57  ;;  %v3098_v57 = vld [vmem:[%s4897_s8 + $0xa8] sm:$0xff]  ;;  %3728 = vmatpush3.bf16.msra.mxu1 %v3727_v11 }
0x1d34   : > { %v3709_v27 = vpack.c.bf16 %v3098_v57, %v3097_v0  ;;  %3729 = vmatprep.subr.bf16.mxu1 %v3903_v53 }
0x1d36   : > { %3710 = vmatpush3.bf16.msra.mxu0 %v3709_v27 }
0x1d37   : > { %3711 = vmatprep.subr.bf16.mxu0 %v3903_v53 }
0x1d3a   : > { %3713 = vmatpush3.bf16.msra.mxu0 %v3712_v31 }
0x1d3b   : > { %3714 = vmatprep.subr.bf16.mxu0 %v3903_v53 }
0x1d3e   : > { %3716 = vmatpush3.bf16.msra.mxu0 %v3715_v28 }
0x1d3f   : > { %3717 = vmatprep.subr.bf16.mxu0 %v3903_v53 }
0x1d42   : > { %3719 = vmatpush3.bf16.msra.mxu0 %v3718_v38 }
0x1d43   : > { %3720 = vmatprep.subr.bf16.mxu0 %v3903_v53 }
0x1d46   : > { %3722 = vmatpush3.bf16.msra.mxu0 %v3721_v42 }
0x1d47   : > { %3723 = vmatprep.subr.bf16.mxu0 %v3903_v53  ;;  %v3838_v53 = vld [vmem:[%s4893_s4] sm:$0xff] }
0x1d48   : > { %v2882_v17 = vrot.slane %v3838_v53, 2  ;;  %v2885_v20 = vrot.slane %v3838_v53, 3  ;;  %v2892_v26 = vrot.slane %v3838_v53, 4 }
0x1d4a   : > { %3725 = vmatpush3.bf16.msra.mxu0 %v3724_v47 }
0x1e05   : > { %v2758_v61 = vpop.f32.mrb[40].mxu1 }
0x1e06   : > { %v2759_v43 = vadd.f32 %v2758_v61, %v2688_v48  ;;  %v3499_v49 = vpop.f32.mrb[41].mxu1 }
0x1e08   : > { %v2763_v50 = vmul.f32 0.044715, %v2759_v43  ;;  %v2762_v58 = vmul.f32 0.5, %v2759_v43 }
0x1e0a   : > { %v2764_v51 = vmul.f32 %v2763_v50, %v2759_v43 }
0x1e0c   : > { %v2765_v52 = vmul.f32 %v2764_v51, %v2759_v43 }
0x1e0e   : > { %v2766_v54 = vadd.f32 %v2765_v52, %v2759_v43 }
0x1e10   : > { %v2767_v56 = vmul.f32 0.7978846, %v2766_v54 }
0x1e12   : > { %3834 = vtanh.f32 %v2767_v56 }
0x1e1c   : > { %v3835_v45 = vpop.eup %3834 }
0x1e1d   : > { %v2769_v59 = vadd.f32 1.0, %v3835_v45 }
0x1e1f   : > { %v2770_v1 = vmul.f32 %v2769_v59, %v2762_v58 }
0x1e21   : > { %3533 = vmatmul.mubr.f32.vlgmr.msra.gmra.mrb[10].mxu0 %v2770_v1 }
0x1ef4   : > { %v2858_v2 = vpop.f32.mrb[10].mxu0 }
0x1ef5   : > { %v2859_v3 = vadd.f32 %v2858_v2, %v2791_v32  ;;  %v3534_v40 = vpop.f32.mrb[11].mxu0 }
0x1ef7   : > { %v2866_v33 = vmul.f32 %v2865_v13, %v2859_v3 }
0x1ef9   : > { %v2867_v4 = vadd.f32 %v2866_v33, %v4732_v60  ;;  %v2890_v60 = vld [vmem:[%s4892_s3 + $0x10] sm:$0xff] }
0x1efa   : > { %v3730_v8 = vpack.c.bf16 %v2891_v12, %v2890_v60 }
0x1efb   : > { %v2869_v34 = vsel %vm2868_vm10, %v2867_v4, 0.0 }
0x1efc   : > { %2870 = vadd.xlane.f32.xlu0 %v2869_v34  ;;  %3731 = vmatpush3.bf16.msra.mxu1 %v3730_v8 }
0x1f89   : > { %v2871_v55 = vpop.xlane.xlu0 %2870 }
0x1f8a   : > { %v2872_v6 = vmul.f32 0.03125, %v2871_v55 }
0x1f8c   : > { %v2873_v7 = vsub.f32 %v2867_v4, %v2872_v6 }
0x1f8e   : > { %v2874_v9 = vmul.f32 %v2873_v7, %v2873_v7 }
0x1f90   : > { %v2875_v10 = vsel %vm2868_vm10, %v2874_v9, 0.0 }
0x1f91   : > { %2876 = vadd.xlane.f32.xlu0 %v2875_v10 }
0x201e   : > { %v2877_v14 = vpop.xlane.xlu0 %2876 }
0x201f   : > { %v2878_v15 = vmul.f32 0.03125, %v2877_v14 }
0x2021   : > { %v2879_v16 = vadd.f32 1e-06, %v2878_v15 }
0x2023   : > { %3836 = vrsqrt.f32 %v2879_v16 }
0x202d   : > { %v3837_v18 = vpop.eup %3836 }
0x202e   : > { %v2881_v19 = vmul.f32 %v3837_v18, %v2873_v7 }
0x2030   : > { %v2884_v22 = vmul.f32 %v2882_v17, %v2881_v19 }
0x2032   : > { %v2887_v25 = vadd.f32 %v2885_v20, %v2884_v22 }
0x2034   : > { %3544 = vmatmul.mubr.msk.f32.vlgmr.msra.gmra.mrb[42].mxu1 %vm725_vm3, %v2887_v25 }
0x2107   : > { %v2963_v63 = vpop.f32.mrb[42].mxu1 }
0x2108   : > { %v2964_v5 = vadd.f32 %v2963_v63, %v2892_v26  ;;  %v3545_v0 = vpop.f32.mrb[43].mxu1 }
0x210a   : > { %2967 = vst [vmem:[%s351_s20] sm:$0x1] %v2964_v5 }
0x210b   : > { %3852 = shalt.err (!%p3849_p3)
}
0x210c   : > { %s3853_s21 = scalar_lea.hbm %s4847_s22, 16  ;;  %s3857_s20 = scalar_lea.hbm %s4899_s10, 32 }
0x210d   : > { %p3854_p4 = scmp.ne.s32.totalorder %s4847_s22, %s3853_s21  ;;  %p3858_p9 = scmp.lt.u32.totalorder %s4847_s22, %s4899_s10 }
0x210e   : > { %p3859_p10 = scmp.lt.u32.totalorder %s3857_s20, %s3853_s21  ;;  %p3861_p12 = scmp.lt.u32.totalorder %s3853_s21, %s4847_s22 }
0x210f   : > { %p3855_p7 = pnand %p3854_p4, %p4014_p5 }
0x2110   : > { %p3860_p11 = por %p3859_p10, %p3858_p9 }
0x2111   : > { %p3856_p8 = pneg %p3855_p7 }
0x2112   : > { %p3862_p13 = por %p3861_p12, %p3860_p11 }
0x2114   : > { %p3863_p0 = pnand %p3862_p13, %p3856_p8 }
0x2116   : > { %3866 = shalt.err (!%p3863_p0)
}
0x2117   : > { %3733 = dma.vmem_to_hbm [thread:$0]  (%p4014_p5), %s4849_s25, 16, %s4847_s22, %s2969_s29  }
0x2118 PF: > { %p3739_p1 = scmp.ge.s32.totalorder %s3901_s16, 2  ;;  %s2993_s27 = sand.u32 1, %s3889_s13  }
0x2119   : > { %s2994_s17 = scalar_lea.sflag [#allocation3], %s2993_s27 }
0x211a   : > { %p3736_p2 = pnand %p3739_p1, %p4018_p6 }
0x211c   : > { %3884 = dma.done.wait (!%p3736_p2), %s2994_s17, 16  }
0x211d   : > { %3886 = vsyncadd (!%p3736_p2), %s2994_s17, 4294967280  ;;  %s4925_s11 = sld [smem:[#allocation5_spill]]  ;;  %p20_p3 = scmp.ge.s32.totalorder %s4001_s19, 4  }
0x211e   : > { %s4926_s13 = smov %s3893_s14  ;;  %s4927_s14 = smov %s3897_s15 }
0x211f   : > { %s4929_s16 = smov %s4001_s19  ;;  %22 = sbr.rel (!%p20_p3) target bundleno = 3 (0x3), region = 100 }
0x2123   : > { %s4928_s15 = smov %s4925_s11 }
0x2126   :  { %2998 = vsyncpa [#allocation3], 1 }
0x2127   :  { %3000 = vsyncpa [#allocation3 + $0x1], 1 }

</bundles_post_ra>
